<compile_context>
chip_gen: v7x
topology: tpu7x:2x2x1
jax: 0.10.0
libtpu: 0.0.40
codegen_flags: <defaults>
</compile_context>

<pallas_src>
import functools

import jax
import jax.numpy as jnp
import numpy as np
from jax.experimental import pallas as pl
from jax.experimental.pallas import tpu as pltpu


def _round_up(x, m):
    return ((x + m - 1) // m) * m


def _const_index_map(ndim):
    zeros = (0,) * ndim
    return lambda b, l: zeros


# -----------------------------------------------------------------------------
# Fused TCN kernel factory
# -----------------------------------------------------------------------------
def make_tcn_kernel(kernel_size, layer_info, l_tile):
    """layer_info: tuple of (dilation, has_downsample) per TemporalBlock."""
    n_weight_refs = sum(6 if has_down else 4 for _, has_down in layer_info)

    def kernel(*refs):
        x_ref = refs[0]
        w_refs = refs[1:1 + n_weight_refs]
        o_ref = refs[1 + n_weight_refs]
        scratch = refs[2 + n_weight_refs:]

        l_idx = pl.program_id(1)          # position along the sequential L axis

        def causal_conv(cur, hist_ref, w_ref, b_ref, dilation):
            # cur: (l_tile, Cin) f32 value.
            # hist_ref: (pad + l_tile, Cin) VMEM scratch laid out as
            #           [pad rows of causal history | current tile].
            # w_ref: (k, Cin, Cout); b_ref: (1, Cout) f32.
            pad = (kernel_size - 1) * dilation
            if pad > 0:
                # First tile of each batch row: zero history == causal zero pad.
                @pl.when(l_idx == 0)
                def _():
                    hist_ref[0:pad, :] = jnp.zeros(
                        (pad, hist_ref.shape[1]), hist_ref.dtype)

                # Otherwise carry the last `pad` rows of the previous tile forward.
                @pl.when(l_idx > 0)
                def _():
                    carry = hist_ref[l_tile:l_tile + pad, :]
                    hist_ref[0:pad, :] = carry

                hist_ref[pad:pad + l_tile, :] = cur

            # Tap accumulation: first tap initializes the accumulator.
            acc = None
            for j in range(kernel_size):
                s = (kernel_size - 1 - j) * dilation   # how far back tap j looks
                tap = cur if s == 0 else hist_ref[pad - s:pad - s + l_tile, :]
                term = jnp.dot(tap.astype(w_ref.dtype), w_ref[j],
                               preferred_element_type=jnp.float32)
                acc = term if acc is None else acc + term
            return acc + b_ref[...]

        cur = x_ref[...].astype(jnp.float32)           # (l_tile, C_in)

        wi = 0
        for li, (dilation, has_down) in enumerate(layer_info):
            if has_down:
                w1, b1, w2, b2, wd, bd = w_refs[wi:wi + 6]
                wi += 6
            else:
                w1, b1, w2, b2 = w_refs[wi:wi + 4]
                wi += 4
                wd = bd = None
            hist_x = scratch[2 * li]
            hist_h = scratch[2 * li + 1]

            # conv1 -> chomp -> ReLU
            # TODO(synk): training-mode dropout not implemented (inference identity).
            h = jnp.maximum(causal_conv(cur, hist_x, w1, b1, dilation), 0.0)
            # conv2 -> chomp -> ReLU
            out = jnp.maximum(causal_conv(h, hist_h, w2, b2, dilation), 0.0)
            # residual branch (1x1 conv iff channel counts differ)
            if has_down:
                res = jnp.dot(cur.astype(wd.dtype), wd[...],
                              preferred_element_type=jnp.float32) + bd[...]
            else:
                res = cur
            cur = jnp.maximum(out + res, 0.0)

        o_ref[...] = cur.astype(o_ref.dtype)

    return kernel


# -----------------------------------------------------------------------------
# Wrapper: grid/BlockSpec construction + NCL<->BLC layout plumbing
# -----------------------------------------------------------------------------
def _choose_l_tile(length, target=256):
    cap = min(length, target)
    for cand in range(cap, 0, -1):
        if length % cand == 0 and cand % 8 == 0:
            return cand
    return length


def tcn_forward_pallas(x_ncl, layers, kernel_size, *, l_tile=None):
    """x_ncl: (B, C_in, L) PyTorch Conv1d layout. Returns (B, C_out, L) f32."""
    B, c_in, L = x_ncl.shape
    x_blc = jnp.transpose(x_ncl, (0, 2, 1)).astype(jnp.float32)   # (B, L, C_in)

    if l_tile is None:
        l_tile = _choose_l_tile(L)
    assert L % l_tile == 0, "sequence length must be divisible by the L tile"
    n_l_tiles = L // l_tile

    c_pad = layers[0]["pallas"]["w1"].shape[-1]       # lane-padded channel width
    out_ch = layers[-1]["out_ch"]

    inputs = [x_blc]
    in_specs = [pl.BlockSpec((None, l_tile, c_in), lambda b, l: (b, l, 0))]
    scratch_shapes = []
    layer_info = []
    for i, layer in enumerate(layers):
        p = layer["pallas"]
        dilation = layer["dilation"]
        has_down = "wd" in p
        names = ("w1", "b1", "w2", "b2") + (("wd", "bd") if has_down else ())
        for nm in names:
            arr = p[nm]
            inputs.append(arr)
            # Constant block index: weights stay VMEM-resident (no per-step DMA).
            in_specs.append(pl.BlockSpec(arr.shape, _const_index_map(arr.ndim)))
        pad = (kernel_size - 1) * dilation
        in_rep = c_in if i == 0 else c_pad
        # Carried causal-history scratch per conv stream of this layer.
        scratch_shapes.append(pltpu.VMEM((pad + l_tile, in_rep), jnp.float32))
        scratch_shapes.append(pltpu.VMEM((pad + l_tile, c_pad), jnp.float32))
        layer_info.append((dilation, has_down))

    out_specs = pl.BlockSpec((None, l_tile, c_pad), lambda b, l: (b, l, 0))
    out_shape = jax.ShapeDtypeStruct((B, L, c_pad), jnp.float32)

    kern = make_tcn_kernel(kernel_size, tuple(layer_info), l_tile)
    y_pad = pl.pallas_call(
        kern,
        grid=(B, n_l_tiles),
        in_specs=in_specs,
        out_specs=out_specs,
        out_shape=out_shape,
        scratch_shapes=scratch_shapes,
        compiler_params=pltpu.CompilerParams(
            # B is independent (megacore-shardable); L carries the causal history.
            dimension_semantics=("parallel", "arbitrary"),
            # NOTE: for large L tiles, set vmem_limit_bytes explicitly and halve the
            # L tile on v7x (64 MiB physical VMEM) relative to v5e/v6e.
        ),
    )(*inputs)

    # Drop the lane padding, go back to PyTorch NCL layout.
    return jnp.transpose(y_pad[:, :, :out_ch], (0, 2, 1))


# -----------------------------------------------------------------------------
# Parameter construction (deterministic, synthetic) + weight_norm reparam
# -----------------------------------------------------------------------------
def weight_norm_conv_params(key, out_ch, in_ch, ksize):
    kv, kb = jax.random.split(key)
    v = 0.01 * jax.random.normal(kv, (out_ch, in_ch, ksize), jnp.float32)
    norm = jnp.sqrt(jnp.sum(v * v, axis=(1, 2), keepdims=True))
    g = norm[:, 0, 0]                       # weight_norm init: g = ||v||
    w = g[:, None, None] * v / norm         # effective weight (== v at init)
    b = 0.05 * jax.random.normal(kb, (out_ch,), jnp.float32)
    return w, b                             # torch layout (O, I, K)


def _pad2(a, rows, cols):
    return jnp.pad(a, ((0, rows - a.shape[0]), (0, cols - a.shape[1])))


def build_tcn_params(key, num_inputs, num_hidden_channels, kernel_size):
    c_pad = _round_up(max(num_hidden_channels), 128)    # lane-dense channel width
    layers = []
    for i, out_ch in enumerate(num_hidden_channels):
        in_ch = num_inputs if i == 0 else num_hidden_channels[i - 1]
        in_rep = num_inputs if i == 0 else c_pad         # padded width of the input
        dilation = 2 ** i
        key, k1, k2, k3 = jax.random.split(key, 4)
        w1, b1 = weight_norm_conv_params(k1, out_ch, in_ch, kernel_size)
        w2, b2 = weight_norm_conv_params(k2, out_ch, out_ch, kernel_size)

        # (O, I, K) -> (K, I, O), zero-padded to lane-dense channel widths.
        w1_p = jnp.transpose(w1, (2, 1, 0))
        w1_p = jnp.pad(w1_p, ((0, 0), (0, in_rep - in_ch), (0, c_pad - out_ch)))
        w2_p = jnp.transpose(w2, (2, 1, 0))
        w2_p = jnp.pad(w2_p, ((0, 0), (0, c_pad - out_ch), (0, c_pad - out_ch)))

        layer = {
            "dilation": dilation,
            "out_ch": out_ch,
            "torch": {"w1": w1, "b1": b1, "w2": w2, "b2": b2},
            "pallas": {
                "w1": w1_p, "b1": _pad2(b1.reshape(1, out_ch), 1, c_pad),
                "w2": w2_p, "b2": _pad2(b2.reshape(1, out_ch), 1, c_pad),
            },
        }
        if in_ch != out_ch:
            kd, kdb = jax.random.split(k3)
            wd = 0.01 * jax.random.normal(kd, (out_ch, in_ch, 1), jnp.float32)
            bd = 0.05 * jax.random.normal(kdb, (out_ch,), jnp.float32)
            layer["torch"]["wd"] = wd
            layer["torch"]["bd"] = bd
            wd_p = jnp.transpose(wd[:, :, 0], (1, 0))             # (in_ch, out_ch)
            wd_p = jnp.pad(wd_p, ((0, in_rep - in_ch), (0, c_pad - out_ch)))
            layer["pallas"]["wd"] = wd_p
            layer["pallas"]["bd"] = _pad2(bd.reshape(1, out_ch), 1, c_pad)
        layers.append(layer)
    return layers


def cast_pallas_matmul_dtype(layers, dtype):
    """Cast MXU-operand weights (not biases) to e.g. bf16 for v6e/v7x."""
    out = []
    for layer in layers:
        nl = dict(layer)
        p = dict(layer["pallas"])
        for nm in ("w1", "w2", "wd"):
            if nm in p:
                p[nm] = p[nm].astype(dtype)
        nl["pallas"] = p
        out.append(nl)
    return out


# -----------------------------------------------------------------------------
# Pure-JAX reference (mirrors PyTorch semantics) for verification
# -----------------------------------------------------------------------------
def _ref_causal_conv(x_ncl, w, b, dilation, ksize):
    pad = (ksize - 1) * dilation
    y = jax.lax.conv_general_dilated(
        x_ncl, w, window_strides=(1,), padding=[(pad, pad)],
        rhs_dilation=(dilation,), dimension_numbers=("NCH", "OIH", "NCH"))
    if pad > 0:
        y = y[:, :, :-pad]                      # Chomp1d
    return y + b[None, :, None]


def tcn_forward_reference(x_ncl, layers, kernel_size):
    h = x_ncl.astype(jnp.float32)
    for layer in layers:
        p, d = layer["torch"], layer["dilation"]
        out = jax.nn.relu(_ref_causal_conv(h, p["w1"], p["b1"], d, kernel_size))
        out = jax.nn.relu(_ref_causal_conv(out, p["w2"], p["b2"], d, kernel_size))
        if "wd" in p:
            res = jax.lax.conv_general_dilated(
                h, p["wd"], (1,), [(0, 0)],
                dimension_numbers=("NCH", "OIH", "NCH")) + p["bd"][None, :, None]
        else:
            res = h
        h = jax.nn.relu(out + res)
    return h


# -----------------------------------------------------------------------------
if __name__ == "__main__":
    B, C_IN, L = 2, 4, 16
    HIDDEN = [8, 8, 16]          # 4->8 (downsample), 8->8 (identity), 8->16 (downsample)
    KSIZE = 2

    key = jax.random.PRNGKey(0)
    kx, kp = jax.random.split(key)
    x = jax.random.normal(kx, (B, C_IN, L), jnp.float32)     # PyTorch NCL layout

    layers = build_tcn_params(kp, C_IN, HIDDEN, KSIZE)

    # f32 MXU operands; l_tile=8 exercises the carried causal-halo path (2 L tiles).
    fwd = jax.jit(functools.partial(tcn_forward_pallas, layers=layers,
                                    kernel_size=KSIZE, l_tile=8))
    y = fwd(x)
    jax.block_until_ready(y)

    y_ref = tcn_forward_reference(x, layers, KSIZE)
    assert y.shape == (B, HIDDEN[-1], L)
    np.testing.assert_allclose(np.asarray(y), np.asarray(y_ref),
                               rtol=1e-3, atol=1e-5)

    # bf16 MXU-operand variant (v6e/v7x oriented; f32 accumulation & elementwise).
    layers_bf16 = cast_pallas_matmul_dtype(layers, jnp.bfloat16)
    fwd_bf16 = jax.jit(functools.partial(tcn_forward_pallas, layers=layers_bf16,
                                         kernel_size=KSIZE, l_tile=8))
    y_bf16 = fwd_bf16(x)
    jax.block_until_ready(y_bf16)
    np.testing.assert_allclose(np.asarray(y_bf16), np.asarray(y_ref),
                               rtol=5e-2, atol=5e-2)

    print("KERNEL_OK")
</pallas_src>

<mosaic_0001>
module attributes {stable_mosaic.version = 11 : i64} {
  func.func @kernel(%arg0: i32, %arg1: i32, %arg2: memref<1x8x4xf32, #tpu.memory_space<vmem>>, %arg3: memref<2x4x128xf32, #tpu.memory_space<vmem>>, %arg4: memref<1x128xf32, #tpu.memory_space<vmem>>, %arg5: memref<2x128x128xf32, #tpu.memory_space<vmem>>, %arg6: memref<1x128xf32, #tpu.memory_space<vmem>>, %arg7: memref<4x128xf32, #tpu.memory_space<vmem>>, %arg8: memref<1x128xf32, #tpu.memory_space<vmem>>, %arg9: memref<2x128x128xf32, #tpu.memory_space<vmem>>, %arg10: memref<1x128xf32, #tpu.memory_space<vmem>>, %arg11: memref<2x128x128xf32, #tpu.memory_space<vmem>>, %arg12: memref<1x128xf32, #tpu.memory_space<vmem>>, %arg13: memref<2x128x128xf32, #tpu.memory_space<vmem>>, %arg14: memref<1x128xf32, #tpu.memory_space<vmem>>, %arg15: memref<2x128x128xf32, #tpu.memory_space<vmem>>, %arg16: memref<1x128xf32, #tpu.memory_space<vmem>>, %arg17: memref<128x128xf32, #tpu.memory_space<vmem>>, %arg18: memref<1x128xf32, #tpu.memory_space<vmem>>, %arg19: memref<1x8x128xf32, #tpu.memory_space<vmem>>, %arg20: memref<9x4xf32, #tpu.memory_space<vmem>>, %arg21: memref<9x128xf32, #tpu.memory_space<vmem>>, %arg22: memref<10x128xf32, #tpu.memory_space<vmem>>, %arg23: memref<10x128xf32, #tpu.memory_space<vmem>>, %arg24: memref<12x128xf32, #tpu.memory_space<vmem>>, %arg25: memref<12x128xf32, #tpu.memory_space<vmem>>) attributes {dimension_semantics = [#tpu.dimension_semantics<parallel>, #tpu.dimension_semantics<arbitrary>], iteration_bounds = array<i64: 2, 2>, scalar_prefetch = 0 : i64, scratch_operands = 6 : i64, tpu.core_type = #tpu.core_type<tc>, window_params = [{transform_indices = @transform_0, window_bounds = array<i64: 1, 8, 4>}, {pipeline_mode = #tpu.pipeline_mode<synchronous>, transform_indices = @transform_1, window_bounds = array<i64: 2, 4, 128>}, {pipeline_mode = #tpu.pipeline_mode<synchronous>, transform_indices = @transform_2, window_bounds = array<i64: 1, 128>}, {pipeline_mode = #tpu.pipeline_mode<synchronous>, transform_indices = @transform_3, window_bounds = array<i64: 2, 128, 128>}, {pipeline_mode = #tpu.pipeline_mode<synchronous>, transform_indices = @transform_4, window_bounds = array<i64: 1, 128>}, {pipeline_mode = #tpu.pipeline_mode<synchronous>, transform_indices = @transform_5, window_bounds = array<i64: 4, 128>}, {pipeline_mode = #tpu.pipeline_mode<synchronous>, transform_indices = @transform_6, window_bounds = array<i64: 1, 128>}, {pipeline_mode = #tpu.pipeline_mode<synchronous>, transform_indices = @transform_7, window_bounds = array<i64: 2, 128, 128>}, {pipeline_mode = #tpu.pipeline_mode<synchronous>, transform_indices = @transform_8, window_bounds = array<i64: 1, 128>}, {pipeline_mode = #tpu.pipeline_mode<synchronous>, transform_indices = @transform_9, window_bounds = array<i64: 2, 128, 128>}, {pipeline_mode = #tpu.pipeline_mode<synchronous>, transform_indices = @transform_10, window_bounds = array<i64: 1, 128>}, {pipeline_mode = #tpu.pipeline_mode<synchronous>, transform_indices = @transform_11, window_bounds = array<i64: 2, 128, 128>}, {pipeline_mode = #tpu.pipeline_mode<synchronous>, transform_indices = @transform_12, window_bounds = array<i64: 1, 128>}, {pipeline_mode = #tpu.pipeline_mode<synchronous>, transform_indices = @transform_13, window_bounds = array<i64: 2, 128, 128>}, {pipeline_mode = #tpu.pipeline_mode<synchronous>, transform_indices = @transform_14, window_bounds = array<i64: 1, 128>}, {pipeline_mode = #tpu.pipeline_mode<synchronous>, transform_indices = @transform_15, window_bounds = array<i64: 128, 128>}, {pipeline_mode = #tpu.pipeline_mode<synchronous>, transform_indices = @transform_16, window_bounds = array<i64: 1, 128>}, {transform_indices = @transform_17, window_bounds = array<i64: 1, 8, 128>}]} {
    %c0 = arith.constant 0 : index
    %c0_0 = arith.constant 0 : index
    %c0_1 = arith.constant 0 : index
    %0 = vector.load %arg2[%c0, %c0_0, %c0_1] : memref<1x8x4xf32, #tpu.memory_space<vmem>>, vector<1x8x4xf32>
    %1 = vector.shape_cast %0 : vector<1x8x4xf32> to vector<8x4xf32>
    %c0_i32 = arith.constant 0 : i32
    %2 = arith.cmpi eq, %arg1, %c0_i32 : i32
    %3 = arith.extui %2 : i1 to i32
    %c0_i32_2 = arith.constant 0 : i32
    %4 = arith.cmpi ne, %3, %c0_i32_2 : i32
    scf.if %4 {
      %cst_127 = arith.constant 0.000000e+00 : f32
      %144 = vector.broadcast %cst_127 : f32 to vector<1x4xf32>
      %c0_128 = arith.constant 0 : index
      %c0_129 = arith.constant 0 : index
      %145 = vector.load %arg20[%c0_128, %c0_129] : memref<9x4xf32, #tpu.memory_space<vmem>>, vector<1x4xf32>
      tpu.vector_store %arg20[%c0_128, %c0_129], %144 {strides = array<i32>} : memref<9x4xf32, #tpu.memory_space<vmem>>, vector<1x4xf32>,
    } else {
    }
    %c0_i32_3 = arith.constant 0 : i32
    %5 = arith.cmpi sgt, %arg1, %c0_i32_3 : i32
    %6 = arith.extui %5 : i1 to i32
    %c0_i32_4 = arith.constant 0 : i32
    %7 = arith.cmpi ne, %6, %c0_i32_4 : i32
    scf.if %7 {
      %c8 = arith.constant 8 : index
      %c0_127 = arith.constant 0 : index
      %144 = vector.load %arg20[%c8, %c0_127] : memref<9x4xf32, #tpu.memory_space<vmem>>, vector<1x4xf32>
      %c0_128 = arith.constant 0 : index
      %c0_129 = arith.constant 0 : index
      %145 = vector.load %arg20[%c0_128, %c0_129] : memref<9x4xf32, #tpu.memory_space<vmem>>, vector<1x4xf32>
      tpu.vector_store %arg20[%c0_128, %c0_129], %144 {strides = array<i32>} : memref<9x4xf32, #tpu.memory_space<vmem>>, vector<1x4xf32>,
    } else {
    }
    %c1 = arith.constant 1 : index
    %c0_5 = arith.constant 0 : index
    %8 = vector.load %arg20[%c1, %c0_5] : memref<9x4xf32, #tpu.memory_space<vmem>>, vector<8x4xf32>
    tpu.vector_store %arg20[%c1, %c0_5], %1 {strides = array<i32>} : memref<9x4xf32, #tpu.memory_space<vmem>>, vector<8x4xf32>,
    %c0_6 = arith.constant 0 : index
    %c0_7 = arith.constant 0 : index
    %9 = vector.load %arg20[%c0_6, %c0_7] : memref<9x4xf32, #tpu.memory_space<vmem>>, vector<8x4xf32>
    %c0_8 = arith.constant 0 : index
    %c0_9 = arith.constant 0 : index
    %c0_10 = arith.constant 0 : index
    %10 = vector.load %arg3[%c0_8, %c0_9, %c0_10] : memref<2x4x128xf32, #tpu.memory_space<vmem>>, vector<1x4x128xf32>
    %11 = vector.shape_cast %10 : vector<1x4x128xf32> to vector<4x128xf32>
    %cst = arith.constant dense<0.000000e+00> : vector<8x128xf32>
    %12 = tpu.matmul %9, %11, %cst {dimension_numbers = #tpu.dot_dimension_numbers<[1], [0], [0], [1], [0, 0, 1, 1], [], []>} : vector<8x4xf32>, vector<4x128xf32>, vector<8x128xf32> -> vector<8x128xf32>
    %c1_11 = arith.constant 1 : index
    %c0_12 = arith.constant 0 : index
    %c0_13 = arith.constant 0 : index
    %13 = vector.load %arg3[%c1_11, %c0_12, %c0_13] : memref<2x4x128xf32, #tpu.memory_space<vmem>>, vector<1x4x128xf32>
    %14 = vector.shape_cast %13 : vector<1x4x128xf32> to vector<4x128xf32>
    %cst_14 = arith.constant dense<0.000000e+00> : vector<8x128xf32>
    %15 = tpu.matmul %1, %14, %cst_14 {dimension_numbers = #tpu.dot_dimension_numbers<[1], [0], [0], [1], [0, 0, 1, 1], [], []>} : vector<8x4xf32>, vector<4x128xf32>, vector<8x128xf32> -> vector<8x128xf32>
    %16 = arith.addf %12, %15 : vector<8x128xf32>
    %c0_15 = arith.constant 0 : index
    %c0_16 = arith.constant 0 : index
    %17 = vector.load %arg4[%c0_15, %c0_16] : memref<1x128xf32, #tpu.memory_space<vmem>>, vector<1x128xf32>
    %18 = vector.broadcast %17 : vector<1x128xf32> to vector<8x128xf32>
    %19 = arith.addf %16, %18 : vector<8x128xf32>
    %cst_17 = arith.constant 0.000000e+00 : f32
    %20 = vector.broadcast %cst_17 : f32 to vector<8x128xf32>
    %21 = arith.maximumf %19, %20 : vector<8x128xf32>
    %c0_i32_18 = arith.constant 0 : i32
    %22 = arith.cmpi eq, %arg1, %c0_i32_18 : i32
    %23 = arith.extui %22 : i1 to i32
    %c0_i32_19 = arith.constant 0 : i32
    %24 = arith.cmpi ne, %23, %c0_i32_19 : i32
    scf.if %24 {
      %cst_127 = arith.constant 0.000000e+00 : f32
      %144 = vector.broadcast %cst_127 : f32 to vector<1x128xf32>
      %c0_128 = arith.constant 0 : index
      %c0_129 = arith.constant 0 : index
      %145 = vector.load %arg21[%c0_128, %c0_129] : memref<9x128xf32, #tpu.memory_space<vmem>>, vector<1x128xf32>
      tpu.vector_store %arg21[%c0_128, %c0_129], %144 {strides = array<i32>} : memref<9x128xf32, #tpu.memory_space<vmem>>, vector<1x128xf32>,
    } else {
    }
    %c0_i32_20 = arith.constant 0 : i32
    %25 = arith.cmpi sgt, %arg1, %c0_i32_20 : i32
    %26 = arith.extui %25 : i1 to i32
    %c0_i32_21 = arith.constant 0 : i32
    %27 = arith.cmpi ne, %26, %c0_i32_21 : i32
    scf.if %27 {
      %c8 = arith.constant 8 : index
      %c0_127 = arith.constant 0 : index
      %144 = vector.load %arg21[%c8, %c0_127] : memref<9x128xf32, #tpu.memory_space<vmem>>, vector<1x128xf32>
      %c0_128 = arith.constant 0 : index
      %c0_129 = arith.constant 0 : index
      %145 = vector.load %arg21[%c0_128, %c0_129] : memref<9x128xf32, #tpu.memory_space<vmem>>, vector<1x128xf32>
      tpu.vector_store %arg21[%c0_128, %c0_129], %144 {strides = array<i32>} : memref<9x128xf32, #tpu.memory_space<vmem>>, vector<1x128xf32>,
    } else {
    }
    %c1_22 = arith.constant 1 : index
    %c0_23 = arith.constant 0 : index
    %28 = vector.load %arg21[%c1_22, %c0_23] : memref<9x128xf32, #tpu.memory_space<vmem>>, vector<8x128xf32>
    tpu.vector_store %arg21[%c1_22, %c0_23], %21 {strides = array<i32>} : memref<9x128xf32, #tpu.memory_space<vmem>>, vector<8x128xf32>,
    %c0_24 = arith.constant 0 : index
    %c0_25 = arith.constant 0 : index
    %29 = vector.load %arg21[%c0_24, %c0_25] : memref<9x128xf32, #tpu.memory_space<vmem>>, vector<8x128xf32>
    %c0_26 = arith.constant 0 : index
    %c0_27 = arith.constant 0 : index
    %c0_28 = arith.constant 0 : index
    %30 = vector.load %arg5[%c0_26, %c0_27, %c0_28] : memref<2x128x128xf32, #tpu.memory_space<vmem>>, vector<1x128x128xf32>
    %31 = vector.shape_cast %30 : vector<1x128x128xf32> to vector<128x128xf32>
    %cst_29 = arith.constant dense<0.000000e+00> : vector<8x128xf32>
    %32 = tpu.matmul %29, %31, %cst_29 {dimension_numbers = #tpu.dot_dimension_numbers<[1], [0], [0], [1], [0, 0, 1, 1], [], []>} : vector<8x128xf32>, vector<128x128xf32>, vector<8x128xf32> -> vector<8x128xf32>
    %c1_30 = arith.constant 1 : index
    %c0_31 = arith.constant 0 : index
    %c0_32 = arith.constant 0 : index
    %33 = vector.load %arg5[%c1_30, %c0_31, %c0_32] : memref<2x128x128xf32, #tpu.memory_space<vmem>>, vector<1x128x128xf32>
    %34 = vector.shape_cast %33 : vector<1x128x128xf32> to vector<128x128xf32>
    %cst_33 = arith.constant dense<0.000000e+00> : vector<8x128xf32>
    %35 = tpu.matmul %21, %34, %cst_33 {dimension_numbers = #tpu.dot_dimension_numbers<[1], [0], [0], [1], [0, 0, 1, 1], [], []>} : vector<8x128xf32>, vector<128x128xf32>, vector<8x128xf32> -> vector<8x128xf32>
    %36 = arith.addf %32, %35 : vector<8x128xf32>
    %c0_34 = arith.constant 0 : index
    %c0_35 = arith.constant 0 : index
    %37 = vector.load %arg6[%c0_34, %c0_35] : memref<1x128xf32, #tpu.memory_space<vmem>>, vector<1x128xf32>
    %38 = vector.broadcast %37 : vector<1x128xf32> to vector<8x128xf32>
    %39 = arith.addf %36, %38 : vector<8x128xf32>
    %cst_36 = arith.constant 0.000000e+00 : f32
    %40 = vector.broadcast %cst_36 : f32 to vector<8x128xf32>
    %41 = arith.maximumf %39, %40 : vector<8x128xf32>
    %c0_37 = arith.constant 0 : index
    %c0_38 = arith.constant 0 : index
    %42 = vector.load %arg7[%c0_37, %c0_38] : memref<4x128xf32, #tpu.memory_space<vmem>>, vector<4x128xf32>
    %cst_39 = arith.constant dense<0.000000e+00> : vector<8x128xf32>
    %43 = tpu.matmul %1, %42, %cst_39 {dimension_numbers = #tpu.dot_dimension_numbers<[1], [0], [0], [1], [0, 0, 1, 1], [], []>} : vector<8x4xf32>, vector<4x128xf32>, vector<8x128xf32> -> vector<8x128xf32>
    %c0_40 = arith.constant 0 : index
    %c0_41 = arith.constant 0 : index
    %44 = vector.load %arg8[%c0_40, %c0_41] : memref<1x128xf32, #tpu.memory_space<vmem>>, vector<1x128xf32>
    %45 = vector.broadcast %44 : vector<1x128xf32> to vector<8x128xf32>
    %46 = arith.addf %43, %45 : vector<8x128xf32>
    %47 = arith.addf %41, %46 : vector<8x128xf32>
    %cst_42 = arith.constant 0.000000e+00 : f32
    %48 = vector.broadcast %cst_42 : f32 to vector<8x128xf32>
    %49 = arith.maximumf %47, %48 : vector<8x128xf32>
    %c0_i32_43 = arith.constant 0 : i32
    %50 = arith.cmpi eq, %arg1, %c0_i32_43 : i32
    %51 = arith.extui %50 : i1 to i32
    %c0_i32_44 = arith.constant 0 : i32
    %52 = arith.cmpi ne, %51, %c0_i32_44 : i32
    scf.if %52 {
      %cst_127 = arith.constant 0.000000e+00 : f32
      %144 = vector.broadcast %cst_127 : f32 to vector<2x128xf32>
      %c0_128 = arith.constant 0 : index
      %c0_129 = arith.constant 0 : index
      %145 = vector.load %arg22[%c0_128, %c0_129] : memref<10x128xf32, #tpu.memory_space<vmem>>, vector<2x128xf32>
      tpu.vector_store %arg22[%c0_128, %c0_129], %144 {strides = array<i32>} : memref<10x128xf32, #tpu.memory_space<vmem>>, vector<2x128xf32>,
    } else {
    }
    %c0_i32_45 = arith.constant 0 : i32
    %53 = arith.cmpi sgt, %arg1, %c0_i32_45 : i32
    %54 = arith.extui %53 : i1 to i32
    %c0_i32_46 = arith.constant 0 : i32
    %55 = arith.cmpi ne, %54, %c0_i32_46 : i32
    scf.if %55 {
      %c8 = arith.constant 8 : index
      %c0_127 = arith.constant 0 : index
      %144 = vector.load %arg22[%c8, %c0_127] : memref<10x128xf32, #tpu.memory_space<vmem>>, vector<2x128xf32>
      %c0_128 = arith.constant 0 : index
      %c0_129 = arith.constant 0 : index
      %145 = vector.load %arg22[%c0_128, %c0_129] : memref<10x128xf32, #tpu.memory_space<vmem>>, vector<2x128xf32>
      tpu.vector_store %arg22[%c0_128, %c0_129], %144 {strides = array<i32>} : memref<10x128xf32, #tpu.memory_space<vmem>>, vector<2x128xf32>,
    } else {
    }
    %c2 = arith.constant 2 : index
    %c0_47 = arith.constant 0 : index
    %56 = vector.load %arg22[%c2, %c0_47] : memref<10x128xf32, #tpu.memory_space<vmem>>, vector<8x128xf32>
    tpu.vector_store %arg22[%c2, %c0_47], %49 {strides = array<i32>} : memref<10x128xf32, #tpu.memory_space<vmem>>, vector<8x128xf32>,
    %c0_48 = arith.constant 0 : index
    %c0_49 = arith.constant 0 : index
    %57 = vector.load %arg22[%c0_48, %c0_49] : memref<10x128xf32, #tpu.memory_space<vmem>>, vector<8x128xf32>
    %c0_50 = arith.constant 0 : index
    %c0_51 = arith.constant 0 : index
    %c0_52 = arith.constant 0 : index
    %58 = vector.load %arg9[%c0_50, %c0_51, %c0_52] : memref<2x128x128xf32, #tpu.memory_space<vmem>>, vector<1x128x128xf32>
    %59 = vector.shape_cast %58 : vector<1x128x128xf32> to vector<128x128xf32>
    %cst_53 = arith.constant dense<0.000000e+00> : vector<8x128xf32>
    %60 = tpu.matmul %57, %59, %cst_53 {dimension_numbers = #tpu.dot_dimension_numbers<[1], [0], [0], [1], [0, 0, 1, 1], [], []>} : vector<8x128xf32>, vector<128x128xf32>, vector<8x128xf32> -> vector<8x128xf32>
    %c1_54 = arith.constant 1 : index
    %c0_55 = arith.constant 0 : index
    %c0_56 = arith.constant 0 : index
    %61 = vector.load %arg9[%c1_54, %c0_55, %c0_56] : memref<2x128x128xf32, #tpu.memory_space<vmem>>, vector<1x128x128xf32>
    %62 = vector.shape_cast %61 : vector<1x128x128xf32> to vector<128x128xf32>
    %cst_57 = arith.constant dense<0.000000e+00> : vector<8x128xf32>
    %63 = tpu.matmul %49, %62, %cst_57 {dimension_numbers = #tpu.dot_dimension_numbers<[1], [0], [0], [1], [0, 0, 1, 1], [], []>} : vector<8x128xf32>, vector<128x128xf32>, vector<8x128xf32> -> vector<8x128xf32>
    %64 = arith.addf %60, %63 : vector<8x128xf32>
    %c0_58 = arith.constant 0 : index
    %c0_59 = arith.constant 0 : index
    %65 = vector.load %arg10[%c0_58, %c0_59] : memref<1x128xf32, #tpu.memory_space<vmem>>, vector<1x128xf32>
    %66 = vector.broadcast %65 : vector<1x128xf32> to vector<8x128xf32>
    %67 = arith.addf %64, %66 : vector<8x128xf32>
    %cst_60 = arith.constant 0.000000e+00 : f32
    %68 = vector.broadcast %cst_60 : f32 to vector<8x128xf32>
    %69 = arith.maximumf %67, %68 : vector<8x128xf32>
    %c0_i32_61 = arith.constant 0 : i32
    %70 = arith.cmpi eq, %arg1, %c0_i32_61 : i32
    %71 = arith.extui %70 : i1 to i32
    %c0_i32_62 = arith.constant 0 : i32
    %72 = arith.cmpi ne, %71, %c0_i32_62 : i32
    scf.if %72 {
      %cst_127 = arith.constant 0.000000e+00 : f32
      %144 = vector.broadcast %cst_127 : f32 to vector<2x128xf32>
      %c0_128 = arith.constant 0 : index
      %c0_129 = arith.constant 0 : index
      %145 = vector.load %arg23[%c0_128, %c0_129] : memref<10x128xf32, #tpu.memory_space<vmem>>, vector<2x128xf32>
      tpu.vector_store %arg23[%c0_128, %c0_129], %144 {strides = array<i32>} : memref<10x128xf32, #tpu.memory_space<vmem>>, vector<2x128xf32>,
    } else {
    }
    %c0_i32_63 = arith.constant 0 : i32
    %73 = arith.cmpi sgt, %arg1, %c0_i32_63 : i32
    %74 = arith.extui %73 : i1 to i32
    %c0_i32_64 = arith.constant 0 : i32
    %75 = arith.cmpi ne, %74, %c0_i32_64 : i32
    scf.if %75 {
      %c8 = arith.constant 8 : index
      %c0_127 = arith.constant 0 : index
      %144 = vector.load %arg23[%c8, %c0_127] : memref<10x128xf32, #tpu.memory_space<vmem>>, vector<2x128xf32>
      %c0_128 = arith.constant 0 : index
      %c0_129 = arith.constant 0 : index
      %145 = vector.load %arg23[%c0_128, %c0_129] : memref<10x128xf32, #tpu.memory_space<vmem>>, vector<2x128xf32>
      tpu.vector_store %arg23[%c0_128, %c0_129], %144 {strides = array<i32>} : memref<10x128xf32, #tpu.memory_space<vmem>>, vector<2x128xf32>,
    } else {
    }
    %c2_65 = arith.constant 2 : index
    %c0_66 = arith.constant 0 : index
    %76 = vector.load %arg23[%c2_65, %c0_66] : memref<10x128xf32, #tpu.memory_space<vmem>>, vector<8x128xf32>
    tpu.vector_store %arg23[%c2_65, %c0_66], %69 {strides = array<i32>} : memref<10x128xf32, #tpu.memory_space<vmem>>, vector<8x128xf32>,
    %c0_67 = arith.constant 0 : index
    %c0_68 = arith.constant 0 : index
    %77 = vector.load %arg23[%c0_67, %c0_68] : memref<10x128xf32, #tpu.memory_space<vmem>>, vector<8x128xf32>
    %c0_69 = arith.constant 0 : index
    %c0_70 = arith.constant 0 : index
    %c0_71 = arith.constant 0 : index
    %78 = vector.load %arg11[%c0_69, %c0_70, %c0_71] : memref<2x128x128xf32, #tpu.memory_space<vmem>>, vector<1x128x128xf32>
    %79 = vector.shape_cast %78 : vector<1x128x128xf32> to vector<128x128xf32>
    %cst_72 = arith.constant dense<0.000000e+00> : vector<8x128xf32>
    %80 = tpu.matmul %77, %79, %cst_72 {dimension_numbers = #tpu.dot_dimension_numbers<[1], [0], [0], [1], [0, 0, 1, 1], [], []>} : vector<8x128xf32>, vector<128x128xf32>, vector<8x128xf32> -> vector<8x128xf32>
    %c1_73 = arith.constant 1 : index
    %c0_74 = arith.constant 0 : index
    %c0_75 = arith.constant 0 : index
    %81 = vector.load %arg11[%c1_73, %c0_74, %c0_75] : memref<2x128x128xf32, #tpu.memory_space<vmem>>, vector<1x128x128xf32>
    %82 = vector.shape_cast %81 : vector<1x128x128xf32> to vector<128x128xf32>
    %cst_76 = arith.constant dense<0.000000e+00> : vector<8x128xf32>
    %83 = tpu.matmul %69, %82, %cst_76 {dimension_numbers = #tpu.dot_dimension_numbers<[1], [0], [0], [1], [0, 0, 1, 1], [], []>} : vector<8x128xf32>, vector<128x128xf32>, vector<8x128xf32> -> vector<8x128xf32>
    %84 = arith.addf %80, %83 : vector<8x128xf32>
    %c0_77 = arith.constant 0 : index
    %c0_78 = arith.constant 0 : index
    %85 = vector.load %arg12[%c0_77, %c0_78] : memref<1x128xf32, #tpu.memory_space<vmem>>, vector<1x128xf32>
    %86 = vector.broadcast %85 : vector<1x128xf32> to vector<8x128xf32>
    %87 = arith.addf %84, %86 : vector<8x128xf32>
    %cst_79 = arith.constant 0.000000e+00 : f32
    %88 = vector.broadcast %cst_79 : f32 to vector<8x128xf32>
    %89 = arith.maximumf %87, %88 : vector<8x128xf32>
    %90 = arith.addf %89, %49 : vector<8x128xf32>
    %cst_80 = arith.constant 0.000000e+00 : f32
    %91 = vector.broadcast %cst_80 : f32 to vector<8x128xf32>
    %92 = arith.maximumf %90, %91 : vector<8x128xf32>
    %c0_i32_81 = arith.constant 0 : i32
    %93 = arith.cmpi eq, %arg1, %c0_i32_81 : i32
    %94 = arith.extui %93 : i1 to i32
    %c0_i32_82 = arith.constant 0 : i32
    %95 = arith.cmpi ne, %94, %c0_i32_82 : i32
    scf.if %95 {
      %cst_127 = arith.constant 0.000000e+00 : f32
      %144 = vector.broadcast %cst_127 : f32 to vector<4x128xf32>
      %c0_128 = arith.constant 0 : index
      %c0_129 = arith.constant 0 : index
      %145 = vector.load %arg24[%c0_128, %c0_129] : memref<12x128xf32, #tpu.memory_space<vmem>>, vector<4x128xf32>
      tpu.vector_store %arg24[%c0_128, %c0_129], %144 {strides = array<i32>} : memref<12x128xf32, #tpu.memory_space<vmem>>, vector<4x128xf32>,
    } else {
    }
    %c0_i32_83 = arith.constant 0 : i32
    %96 = arith.cmpi sgt, %arg1, %c0_i32_83 : i32
    %97 = arith.extui %96 : i1 to i32
    %c0_i32_84 = arith.constant 0 : i32
    %98 = arith.cmpi ne, %97, %c0_i32_84 : i32
    scf.if %98 {
      %c8 = arith.constant 8 : index
      %c0_127 = arith.constant 0 : index
      %144 = vector.load %arg24[%c8, %c0_127] : memref<12x128xf32, #tpu.memory_space<vmem>>, vector<4x128xf32>
      %c0_128 = arith.constant 0 : index
      %c0_129 = arith.constant 0 : index
      %145 = vector.load %arg24[%c0_128, %c0_129] : memref<12x128xf32, #tpu.memory_space<vmem>>, vector<4x128xf32>
      tpu.vector_store %arg24[%c0_128, %c0_129], %144 {strides = array<i32>} : memref<12x128xf32, #tpu.memory_space<vmem>>, vector<4x128xf32>,
    } else {
    }
    %c4 = arith.constant 4 : index
    %c0_85 = arith.constant 0 : index
    %99 = vector.load %arg24[%c4, %c0_85] : memref<12x128xf32, #tpu.memory_space<vmem>>, vector<8x128xf32>
    tpu.vector_store %arg24[%c4, %c0_85], %92 {strides = array<i32>} : memref<12x128xf32, #tpu.memory_space<vmem>>, vector<8x128xf32>,
    %c0_86 = arith.constant 0 : index
    %c0_87 = arith.constant 0 : index
    %100 = vector.load %arg24[%c0_86, %c0_87] : memref<12x128xf32, #tpu.memory_space<vmem>>, vector<8x128xf32>
    %c0_88 = arith.constant 0 : index
    %c0_89 = arith.constant 0 : index
    %c0_90 = arith.constant 0 : index
    %101 = vector.load %arg13[%c0_88, %c0_89, %c0_90] : memref<2x128x128xf32, #tpu.memory_space<vmem>>, vector<1x128x128xf32>
    %102 = vector.shape_cast %101 : vector<1x128x128xf32> to vector<128x128xf32>
    %cst_91 = arith.constant dense<0.000000e+00> : vector<8x128xf32>
    %103 = tpu.matmul %100, %102, %cst_91 {dimension_numbers = #tpu.dot_dimension_numbers<[1], [0], [0], [1], [0, 0, 1, 1], [], []>} : vector<8x128xf32>, vector<128x128xf32>, vector<8x128xf32> -> vector<8x128xf32>
    %c1_92 = arith.constant 1 : index
    %c0_93 = arith.constant 0 : index
    %c0_94 = arith.constant 0 : index
    %104 = vector.load %arg13[%c1_92, %c0_93, %c0_94] : memref<2x128x128xf32, #tpu.memory_space<vmem>>, vector<1x128x128xf32>
    %105 = vector.shape_cast %104 : vector<1x128x128xf32> to vector<128x128xf32>
    %cst_95 = arith.constant dense<0.000000e+00> : vector<8x128xf32>
    %106 = tpu.matmul %92, %105, %cst_95 {dimension_numbers = #tpu.dot_dimension_numbers<[1], [0], [0], [1], [0, 0, 1, 1], [], []>} : vector<8x128xf32>, vector<128x128xf32>, vector<8x128xf32> -> vector<8x128xf32>
    %107 = arith.addf %103, %106 : vector<8x128xf32>
    %c0_96 = arith.constant 0 : index
    %c0_97 = arith.constant 0 : index
    %108 = vector.load %arg14[%c0_96, %c0_97] : memref<1x128xf32, #tpu.memory_space<vmem>>, vector<1x128xf32>
    %109 = vector.broadcast %108 : vector<1x128xf32> to vector<8x128xf32>
    %110 = arith.addf %107, %109 : vector<8x128xf32>
    %cst_98 = arith.constant 0.000000e+00 : f32
    %111 = vector.broadcast %cst_98 : f32 to vector<8x128xf32>
    %112 = arith.maximumf %110, %111 : vector<8x128xf32>
    %c0_i32_99 = arith.constant 0 : i32
    %113 = arith.cmpi eq, %arg1, %c0_i32_99 : i32
    %114 = arith.extui %113 : i1 to i32
    %c0_i32_100 = arith.constant 0 : i32
    %115 = arith.cmpi ne, %114, %c0_i32_100 : i32
    scf.if %115 {
      %cst_127 = arith.constant 0.000000e+00 : f32
      %144 = vector.broadcast %cst_127 : f32 to vector<4x128xf32>
      %c0_128 = arith.constant 0 : index
      %c0_129 = arith.constant 0 : index
      %145 = vector.load %arg25[%c0_128, %c0_129] : memref<12x128xf32, #tpu.memory_space<vmem>>, vector<4x128xf32>
      tpu.vector_store %arg25[%c0_128, %c0_129], %144 {strides = array<i32>} : memref<12x128xf32, #tpu.memory_space<vmem>>, vector<4x128xf32>,
    } else {
    }
    %c0_i32_101 = arith.constant 0 : i32
    %116 = arith.cmpi sgt, %arg1, %c0_i32_101 : i32
    %117 = arith.extui %116 : i1 to i32
    %c0_i32_102 = arith.constant 0 : i32
    %118 = arith.cmpi ne, %117, %c0_i32_102 : i32
    scf.if %118 {
      %c8 = arith.constant 8 : index
      %c0_127 = arith.constant 0 : index
      %144 = vector.load %arg25[%c8, %c0_127] : memref<12x128xf32, #tpu.memory_space<vmem>>, vector<4x128xf32>
      %c0_128 = arith.constant 0 : index
      %c0_129 = arith.constant 0 : index
      %145 = vector.load %arg25[%c0_128, %c0_129] : memref<12x128xf32, #tpu.memory_space<vmem>>, vector<4x128xf32>
      tpu.vector_store %arg25[%c0_128, %c0_129], %144 {strides = array<i32>} : memref<12x128xf32, #tpu.memory_space<vmem>>, vector<4x128xf32>,
    } else {
    }
    %c4_103 = arith.constant 4 : index
    %c0_104 = arith.constant 0 : index
    %119 = vector.load %arg25[%c4_103, %c0_104] : memref<12x128xf32, #tpu.memory_space<vmem>>, vector<8x128xf32>
    tpu.vector_store %arg25[%c4_103, %c0_104], %112 {strides = array<i32>} : memref<12x128xf32, #tpu.memory_space<vmem>>, vector<8x128xf32>,
    %c0_105 = arith.constant 0 : index
    %c0_106 = arith.constant 0 : index
    %120 = vector.load %arg25[%c0_105, %c0_106] : memref<12x128xf32, #tpu.memory_space<vmem>>, vector<8x128xf32>
    %c0_107 = arith.constant 0 : index
    %c0_108 = arith.constant 0 : index
    %c0_109 = arith.constant 0 : index
    %121 = vector.load %arg15[%c0_107, %c0_108, %c0_109] : memref<2x128x128xf32, #tpu.memory_space<vmem>>, vector<1x128x128xf32>
    %122 = vector.shape_cast %121 : vector<1x128x128xf32> to vector<128x128xf32>
    %cst_110 = arith.constant dense<0.000000e+00> : vector<8x128xf32>
    %123 = tpu.matmul %120, %122, %cst_110 {dimension_numbers = #tpu.dot_dimension_numbers<[1], [0], [0], [1], [0, 0, 1, 1], [], []>} : vector<8x128xf32>, vector<128x128xf32>, vector<8x128xf32> -> vector<8x128xf32>
    %c1_111 = arith.constant 1 : index
    %c0_112 = arith.constant 0 : index
    %c0_113 = arith.constant 0 : index
    %124 = vector.load %arg15[%c1_111, %c0_112, %c0_113] : memref<2x128x128xf32, #tpu.memory_space<vmem>>, vector<1x128x128xf32>
    %125 = vector.shape_cast %124 : vector<1x128x128xf32> to vector<128x128xf32>
    %cst_114 = arith.constant dense<0.000000e+00> : vector<8x128xf32>
    %126 = tpu.matmul %112, %125, %cst_114 {dimension_numbers = #tpu.dot_dimension_numbers<[1], [0], [0], [1], [0, 0, 1, 1], [], []>} : vector<8x128xf32>, vector<128x128xf32>, vector<8x128xf32> -> vector<8x128xf32>
    %127 = arith.addf %123, %126 : vector<8x128xf32>
    %c0_115 = arith.constant 0 : index
    %c0_116 = arith.constant 0 : index
    %128 = vector.load %arg16[%c0_115, %c0_116] : memref<1x128xf32, #tpu.memory_space<vmem>>, vector<1x128xf32>
    %129 = vector.broadcast %128 : vector<1x128xf32> to vector<8x128xf32>
    %130 = arith.addf %127, %129 : vector<8x128xf32>
    %cst_117 = arith.constant 0.000000e+00 : f32
    %131 = vector.broadcast %cst_117 : f32 to vector<8x128xf32>
    %132 = arith.maximumf %130, %131 : vector<8x128xf32>
    %c0_118 = arith.constant 0 : index
    %c0_119 = arith.constant 0 : index
    %133 = vector.load %arg17[%c0_118, %c0_119] : memref<128x128xf32, #tpu.memory_space<vmem>>, vector<128x128xf32>
    %cst_120 = arith.constant dense<0.000000e+00> : vector<8x128xf32>
    %134 = tpu.matmul %92, %133, %cst_120 {dimension_numbers = #tpu.dot_dimension_numbers<[1], [0], [0], [1], [0, 0, 1, 1], [], []>} : vector<8x128xf32>, vector<128x128xf32>, vector<8x128xf32> -> vector<8x128xf32>
    %c0_121 = arith.constant 0 : index
    %c0_122 = arith.constant 0 : index
    %135 = vector.load %arg18[%c0_121, %c0_122] : memref<1x128xf32, #tpu.memory_space<vmem>>, vector<1x128xf32>
    %136 = vector.broadcast %135 : vector<1x128xf32> to vector<8x128xf32>
    %137 = arith.addf %134, %136 : vector<8x128xf32>
    %138 = arith.addf %132, %137 : vector<8x128xf32>
    %cst_123 = arith.constant 0.000000e+00 : f32
    %139 = vector.broadcast %cst_123 : f32 to vector<8x128xf32>
    %140 = arith.maximumf %138, %139 : vector<8x128xf32>
    %c0_124 = arith.constant 0 : index
    %c0_125 = arith.constant 0 : index
    %c0_126 = arith.constant 0 : index
    %141 = vector.load %arg19[%c0_124, %c0_125, %c0_126] : memref<1x8x128xf32, #tpu.memory_space<vmem>>, vector<1x8x128xf32>
    %142 = vector.shape_cast %141 : vector<1x8x128xf32> to vector<8x128xf32>
    %143 = vector.shape_cast %140 : vector<8x128xf32> to vector<1x8x128xf32>
    tpu.vector_store %arg19[%c0_124, %c0_125, %c0_126], %143 {strides = array<i32>} : memref<1x8x128xf32, #tpu.memory_space<vmem>>, vector<1x8x128xf32>,
    return
  }
  func.func @transform_0(%arg0: i32, %arg1: i32) -> (i32, i32, i32) {
    %c0_i32 = arith.constant 0 : i32
    %c0_i32_0 = arith.constant 0 : i32
    return %arg0, %arg1, %c0_i32 : i32, i32, i32
  }
  func.func @transform_1(%arg0: i32, %arg1: i32) -> (i32, i32, i32) {
    %c0_i32 = arith.constant 0 : i32
    %c0_i32_0 = arith.constant 0 : i32
    %c0_i32_1 = arith.constant 0 : i32
    %c0_i32_2 = arith.constant 0 : i32
    return %c0_i32, %c0_i32_0, %c0_i32_1 : i32, i32, i32
  }
  func.func @transform_2(%arg0: i32, %arg1: i32) -> (i32, i32) {
    %c0_i32 = arith.constant 0 : i32
    %c0_i32_0 = arith.constant 0 : i32
    %c0_i32_1 = arith.constant 0 : i32
    return %c0_i32, %c0_i32_0 : i32, i32
  }
  func.func @transform_3(%arg0: i32, %arg1: i32) -> (i32, i32, i32) {
    %c0_i32 = arith.constant 0 : i32
    %c0_i32_0 = arith.constant 0 : i32
    %c0_i32_1 = arith.constant 0 : i32
    %c0_i32_2 = arith.constant 0 : i32
    return %c0_i32, %c0_i32_0, %c0_i32_1 : i32, i32, i32
  }
  func.func @transform_4(%arg0: i32, %arg1: i32) -> (i32, i32) {
    %c0_i32 = arith.constant 0 : i32
    %c0_i32_0 = arith.constant 0 : i32
    %c0_i32_1 = arith.constant 0 : i32
    return %c0_i32, %c0_i32_0 : i32, i32
  }
  func.func @transform_5(%arg0: i32, %arg1: i32) -> (i32, i32) {
    %c0_i32 = arith.constant 0 : i32
    %c0_i32_0 = arith.constant 0 : i32
    %c0_i32_1 = arith.constant 0 : i32
    return %c0_i32, %c0_i32_0 : i32, i32
  }
  func.func @transform_6(%arg0: i32, %arg1: i32) -> (i32, i32) {
    %c0_i32 = arith.constant 0 : i32
    %c0_i32_0 = arith.constant 0 : i32
    %c0_i32_1 = arith.constant 0 : i32
    return %c0_i32, %c0_i32_0 : i32, i32
  }
  func.func @transform_7(%arg0: i32, %arg1: i32) -> (i32, i32, i32) {
    %c0_i32 = arith.constant 0 : i32
    %c0_i32_0 = arith.constant 0 : i32
    %c0_i32_1 = arith.constant 0 : i32
    %c0_i32_2 = arith.constant 0 : i32
    return %c0_i32, %c0_i32_0, %c0_i32_1 : i32, i32, i32
  }
  func.func @transform_8(%arg0: i32, %arg1: i32) -> (i32, i32) {
    %c0_i32 = arith.constant 0 : i32
    %c0_i32_0 = arith.constant 0 : i32
    %c0_i32_1 = arith.constant 0 : i32
    return %c0_i32, %c0_i32_0 : i32, i32
  }
  func.func @transform_9(%arg0: i32, %arg1: i32) -> (i32, i32, i32) {
    %c0_i32 = arith.constant 0 : i32
    %c0_i32_0 = arith.constant 0 : i32
    %c0_i32_1 = arith.constant 0 : i32
    %c0_i32_2 = arith.constant 0 : i32
    return %c0_i32, %c0_i32_0, %c0_i32_1 : i32, i32, i32
  }
  func.func @transform_10(%arg0: i32, %arg1: i32) -> (i32, i32) {
    %c0_i32 = arith.constant 0 : i32
    %c0_i32_0 = arith.constant 0 : i32
    %c0_i32_1 = arith.constant 0 : i32
    return %c0_i32, %c0_i32_0 : i32, i32
  }
  func.func @transform_11(%arg0: i32, %arg1: i32) -> (i32, i32, i32) {
    %c0_i32 = arith.constant 0 : i32
    %c0_i32_0 = arith.constant 0 : i32
    %c0_i32_1 = arith.constant 0 : i32
    %c0_i32_2 = arith.constant 0 : i32
    return %c0_i32, %c0_i32_0, %c0_i32_1 : i32, i32, i32
  }
  func.func @transform_12(%arg0: i32, %arg1: i32) -> (i32, i32) {
    %c0_i32 = arith.constant 0 : i32
    %c0_i32_0 = arith.constant 0 : i32
    %c0_i32_1 = arith.constant 0 : i32
    return %c0_i32, %c0_i32_0 : i32, i32
  }
  func.func @transform_13(%arg0: i32, %arg1: i32) -> (i32, i32, i32) {
    %c0_i32 = arith.constant 0 : i32
    %c0_i32_0 = arith.constant 0 : i32
    %c0_i32_1 = arith.constant 0 : i32
    %c0_i32_2 = arith.constant 0 : i32
    return %c0_i32, %c0_i32_0, %c0_i32_1 : i32, i32, i32
  }
  func.func @transform_14(%arg0: i32, %arg1: i32) -> (i32, i32) {
    %c0_i32 = arith.constant 0 : i32
    %c0_i32_0 = arith.constant 0 : i32
    %c0_i32_1 = arith.constant 0 : i32
    return %c0_i32, %c0_i32_0 : i32, i32
  }
  func.func @transform_15(%arg0: i32, %arg1: i32) -> (i32, i32) {
    %c0_i32 = arith.constant 0 : i32
    %c0_i32_0 = arith.constant 0 : i32
    %c0_i32_1 = arith.constant 0 : i32
    return %c0_i32, %c0_i32_0 : i32, i32
  }
  func.func @transform_16(%arg0: i32, %arg1: i32) -> (i32, i32) {
    %c0_i32 = arith.constant 0 : i32
    %c0_i32_0 = arith.constant 0 : i32
    %c0_i32_1 = arith.constant 0 : i32
    return %c0_i32, %c0_i32_0 : i32, i32
  }
  func.func @transform_17(%arg0: i32, %arg1: i32) -> (i32, i32, i32) {
    %c0_i32 = arith.constant 0 : i32
    %c0_i32_0 = arith.constant 0 : i32
    return %arg0, %arg1, %c0_i32 : i32, i32, i32
  }
}

</mosaic_0001>

<bundles_post_ra>
// kernel: tcn_forward_pallas.1
= control target key start
LH: loop header
LB: loop body
LE: loop exit
PB: predicated region body
PF: predicated region fallthrough
CT: control target
= control target key end

     0   :  { %s3951_s0 = inlined_call_operand.vmem [shape: f32[2,16,4], index: 0, kind: input, shape index: {}]   ;;  %s3952_s1 = inlined_call_operand.vmem [shape: f32[2,4,128], index: 1, kind: input, shape index: {}]   ;;  %s3953_s2 = inlined_call_operand.vmem [shape: f32[1,128], index: 2, kind: input, shape index: {}]   ;;  %s3954_s3 = inlined_call_operand.hbm [shape: f32[2,128,128], index: 3, kind: input, shape index: {}]   ;;  %s3955_s4 = inlined_call_operand.vmem [shape: f32[1,128], index: 4, kind: input, shape index: {}]   ;;  %s3956_s5 = inlined_call_operand.vmem [shape: f32[4,128], index: 5, kind: input, shape index: {}]   ;;  %s3957_s6 = inlined_call_operand.vmem [shape: f32[1,128], index: 6, kind: input, shape index: {}]   ;;  %s3958_s7 = inlined_call_operand.hbm [shape: f32[2,128,128], index: 7, kind: input, shape index: {}]   ;;  %s3959_s8 = inlined_call_operand.vmem [shape: f32[1,128], index: 8, kind: input, shape index: {}]   ;;  %s3960_s9 = inlined_call_operand.hbm [shape: f32[2,128,128], index: 9, kind: input, shape index: {}]   ;;  %s3961_s10 = inlined_call_operand.vmem [shape: f32[1,128], index: 10, kind: input, shape index: {}]   ;;  %s3962_s11 = inlined_call_operand.hbm [shape: f32[2,128,128], index: 11, kind: input, shape index: {}]   ;;  %s3963_s12 = inlined_call_operand.vmem [shape: f32[1,128], index: 12, kind: input, shape index: {}]   ;;  %s3964_s13 = inlined_call_operand.hbm [shape: f32[2,128,128], index: 13, kind: input, shape index: {}]   ;;  %s3965_s14 = inlined_call_operand.vmem [shape: f32[1,128], index: 14, kind: input, shape index: {}]   ;;  %s3966_s15 = inlined_call_operand.hbm [shape: f32[128,128], index: 15, kind: input, shape index: {}]   ;;  %s3967_s16 = inlined_call_operand.vmem [shape: f32[1,128], index: 16, kind: input, shape index: {}]   ;;  %s3968_s17 = inlined_call_operand.vmem [shape: f32[2,16,128], index: 17, kind: output, shape index: {}]  }
   0x1   :  { %3976 = sst [smem:[#allocation24_spill]] %s3951_s0 }
   0x2   :  { %3977 = sst [smem:[#allocation25_spill]] %s3952_s1 }
   0x3   :  { %3978 = sst [smem:[#allocation26_spill]] %s3954_s3 }
   0x4   :  { %3979 = sst [smem:[#allocation27_spill]] %s3957_s6 }
   0x5   :  { %3980 = sst [smem:[#allocation28_spill]] %s3958_s7 }
   0x6   :  { %3981 = sst [smem:[#allocation29_spill]] %s3959_s8 }
   0x7   :  { %3982 = sst [smem:[#allocation30_spill]] %s3961_s10 }
   0x8   :  { %3983 = sst [smem:[#allocation31_spill]] %s3962_s11 }
   0x9   :  { %3984 = sst [smem:[#allocation32_spill]] %s3963_s12 }
   0xa   :  { %3985 = sst [smem:[#allocation33_spill]] %s3965_s14 }
   0xb   :  { %3986 = sst [smem:[#allocation34_spill]] %s3967_s16 }
   0xc   :  { %22 = vsyncpa [#allocation9], 0 }
   0xd   :  { %23 = vsyncpa [#allocation11], 0 }
   0xe   :  { %24 = vsyncpa [#allocation14], 0 }
   0xf   :  { %25 = vsyncpa [#allocation17], 0  ;;  %s3493_s24 = smov 0   ;;  %s3495_s25 = smov 0  }
  0x10   :  { %s3497_s26 = smov 0   ;;  %s3499_s27 = smov 0  }
  0x11   :  { %s3501_s28 = smov 0  }
  0x12 LB: > { %3987 = sst [smem:[#allocation22_spill]] %s3384_s28  ;;  %s2143_s29 = sadd.s32 4294967295, %s3384_s28   ;;  %s3384_s28 = sphi %s3501_s28, %s31_s28   ;;  %s3380_s27 = sphi %s3499_s27, %s4013_s27   ;;  %s3376_s26 = sphi %s3497_s26, %s4012_s26   ;;  %s3372_s25 = sphi %s3495_s25, %s4011_s25   ;;  %s3368_s24 = sphi %s3493_s24, %s4010_s24  }
  0x13   : > { %p2145_p0 = scmp.ge.s32.totalorder %s3384_s28, 1  ;;  %p440_p1 = scmp.lt.s32.totalorder %s3384_s28, 5 }
  0x14   : > { %p3521_p2 = scmp.eq.s32.totalorder %s2143_s29, 0  ;;  %s3386_s18 = smov [#allocation10]  }
  0x15   : > { %p3525_p3 = pnand %p2145_p0, %p440_p1  ;;  %s480_s19 = sshll.u32 %s3386_s18, 4  ;;  %s481_s19 = int_to_ptr.vmem [resolvable:$true] %s480_s19 }
  0x16   : > { %s3988_s0 = scalar_select %p3521_p2, 1, 0 }
  0x17   : > { %s3989_s30 = scalar_select %p3525_p3, 1, 0 }
  0x18   : > { %p3074_p4 = pneg %p3525_p3  ;;  %s3387_s1 = smov [#allocation13]  }
  0x19   : > { %s512_s20 = sshll.u32 %s3387_s1, 4  ;;  %s3991_s7 = sld [smem:[#allocation28_spill]]  ;;  %s3531_s20 = int_to_ptr.vmem [resolvable:$true] %s512_s20 }
  0x1a   : > { %p3535_p5 = pnand %p3521_p2, %p3074_p4 }
  0x1c   : > { %p3547_p7 = pneg %p3535_p5 }
  0x1f   : > { %s3162_s29 = scalar_lea.hbm %s3991_s7, 4096 }
  0x20   : > { %p3163_p6 = scmp.ne.s32.totalorder %s3991_s7, %s3162_s29  ;;  %p3169_p10 = scmp.lt.u32.totalorder %s3162_s29, %s3991_s7 }
  0x22   : > { %p3165_p8 = pnand %p3547_p7, %p3163_p6 }
  0x24   : > { %p3166_p9 = pneg %p3165_p8 }
  0x26   : > { %p3171_p11 = pnand %p3169_p10, %p3166_p9 }
  0x28   : > { %3174 = shalt.err (!%p3171_p11)
}
  0x29   : > { %s3175_s22 = scalar_lea.vmem %s481_s19, 4096  ;;  %p3183_p1 = scmp.lt.s32.totalorder %s481_s19, %s481_s19 }
  0x2a   : > { %p3176_p12 = scmp.ne.s32.totalorder %s481_s19, %s3175_s22  ;;  %p3184_p4 = scmp.lt.s32.totalorder %s3175_s22, %s3175_s22 }
  0x2c   : > { %p3178_p13 = pnand %p3176_p12, %p3547_p7  ;;  %p3185_p2 = por %p3184_p4, %p3183_p1 }
  0x2e   : > { %p3179_p0 = pneg %p3178_p13 }
  0x30   : > { %p3186_p3 = pnand %p3185_p2, %p3179_p0 }
  0x32   : > { %3189 = shalt.err (!%p3186_p3)
}
  0x33   : > { %s3974_s16 = smov 128   ;;  %s3389_s28 = smov 8  }
  0x34   : > { %3080 = dma.hbm_to_vmem [thread:$0]  (!%p3535_p5), %s3991_s7, 4096, %s481_s19, [#allocation11], %s3974_s16, %s3974_s16, %s3389_s28  }
  0x35   : > { %s3993_s11 = sld [smem:[#allocation31_spill]] }
  0x3b   : > { %s3190_s12 = scalar_lea.hbm %s3993_s11, 4096 }
  0x3c   : > { %p3191_p2 = scmp.ne.s32.totalorder %s3993_s11, %s3190_s12  ;;  %p3197_p8 = scmp.lt.u32.totalorder %s3190_s12, %s3993_s11 }
  0x3e   : > { %p3193_p3 = pnand %p3191_p2, %p3547_p7 }
  0x40   : > { %p3194_p6 = pneg %p3193_p3 }
  0x42   : > { %p3199_p9 = pnand %p3197_p8, %p3194_p6 }
  0x44   : > { %3202 = shalt.err (!%p3199_p9)
}
  0x45   : > { %s3203_s19 = scalar_lea.vmem %s3531_s20, 4096  ;;  %p3211_p13 = scmp.lt.s32.totalorder %s3531_s20, %s3531_s20 }
  0x46   : > { %p3204_p10 = scmp.ne.s32.totalorder %s3531_s20, %s3203_s19  ;;  %p3212_p0 = scmp.lt.s32.totalorder %s3203_s19, %s3203_s19 }
  0x48   : > { %p3206_p11 = pnand %p3204_p10, %p3547_p7  ;;  %p3213_p1 = por %p3212_p0, %p3211_p13 }
  0x4a   : > { %p3207_p12 = pneg %p3206_p11 }
  0x4c   : > { %p3214_p4 = pnand %p3213_p1, %p3207_p12 }
  0x4e   : > { %3217 = shalt.err (!%p3214_p4)
}
  0x4f   : > { %3086 = dma.hbm_to_vmem [thread:$0]  (!%p3535_p5), %s3993_s11, 4096, %s3531_s20, [#allocation14], %s3974_s16, %s3974_s16, %s3389_s28  }
  0x50   : > { %s40_s10 = sadd.s32 1, %s3376_s26  ;;  %s43_s12 = sadd.s32 1, %s3380_s27 }
  0x51   : > { %p41_p2 = scmp.ge.s32.totalorder %s40_s10, 2  ;;  %s3390_s14 = smov [#allocation8]  }
  0x52   : > { %s458_s23 = sshll.u32 %s3390_s14, 4  ;;  %s3391_s29 = smov [#allocation12]   ;;  %s459_s23 = int_to_ptr.vmem [resolvable:$true] %s458_s23 }
  0x53   : > { %s4015_s10 = smov (%p41_p2, %s40_s10), 0  ;;  %s4017_s12 = smov (!%p41_p2, %s43_s12), %s3380_s27 }
  0x54   : > { %s496_s1 = sshll.u32 %s3391_s29, 4  ;;  %s3994_s3 = sld [smem:[#allocation26_spill]]  ;;  %s497_s1 = int_to_ptr.vmem [resolvable:$true] %s496_s1 }
  0x5a   : > { %s3218_s6 = scalar_lea.hbm %s3994_s3, 4096 }
  0x5b   : > { %p3219_p6 = scmp.ne.s32.totalorder %s3994_s3, %s3218_s6  ;;  %p3225_p10 = scmp.lt.u32.totalorder %s3218_s6, %s3994_s3 }
  0x5d   : > { %p3221_p8 = pnand %p3219_p6, %p3547_p7 }
  0x5f   : > { %p3222_p9 = pneg %p3221_p8 }
  0x61   : > { %p3227_p11 = pnand %p3225_p10, %p3222_p9 }
  0x63   : > { %3230 = shalt.err (!%p3227_p11)
}
  0x64   : > { %s3231_s14 = scalar_lea.vmem %s459_s23, 4096  ;;  %p3239_p1 = scmp.lt.s32.totalorder %s459_s23, %s459_s23 }
  0x65   : > { %p3232_p12 = scmp.ne.s32.totalorder %s459_s23, %s3231_s14  ;;  %p3240_p4 = scmp.lt.s32.totalorder %s3231_s14, %s3231_s14 }
  0x67   : > { %p3234_p13 = pnand %p3232_p12, %p3547_p7  ;;  %p3241_p2 = por %p3240_p4, %p3239_p1 }
  0x69   : > { %p3235_p0 = pneg %p3234_p13 }
  0x6b   : > { %p3242_p3 = pnand %p3241_p2, %p3235_p0 }
  0x6d   : > { %3245 = shalt.err (!%p3242_p3)
}
  0x6e   : > { %s3995_s7 = smov 128   ;;  %p3996_p6 = scmp.ge.s32.totalorder %s4017_s12, 2 }
  0x6f   : > { %3077 = dma.hbm_to_vmem [thread:$0]  (!%p3535_p5), %s3994_s3, 4096, %s459_s23, [#allocation9], %s3995_s7, %s3995_s7, %s3389_s28  }
  0x70   : > { %s4019_s12 = smov (%p3996_p6, %s4017_s12), 0  ;;  %s3246_s6 = scalar_lea.hbm %s3960_s9, 4096 }
  0x71   : > { %3997 = sst [smem:[#allocation23_spill]] %s4019_s12  ;;  %p3247_p3 = scmp.ne.s32.totalorder %s3960_s9, %s3246_s6 }
  0x72   : > { %p3253_p10 = scmp.lt.u32.totalorder %s3246_s6, %s3960_s9 }
  0x73   : > { %p3249_p8 = pnand %p3247_p3, %p3547_p7 }
  0x75   : > { %p3250_p9 = pneg %p3249_p8 }
  0x77   : > { %p3255_p11 = pnand %p3253_p10, %p3250_p9 }
  0x79   : > { %3258 = shalt.err (!%p3255_p11)
}
  0x7a   : > { %s3259_s23 = scalar_lea.vmem %s497_s1, 4096  ;;  %p3267_p1 = scmp.lt.s32.totalorder %s497_s1, %s497_s1 }
  0x7b   : > { %p3260_p12 = scmp.ne.s32.totalorder %s497_s1, %s3259_s23  ;;  %p3268_p4 = scmp.lt.s32.totalorder %s3259_s23, %s3259_s23 }
  0x7d   : > { %p3262_p13 = pnand %p3260_p12, %p3547_p7  ;;  %p3269_p2 = por %p3268_p4, %p3267_p1 }
  0x7f   : > { %p3263_p0 = pneg %p3262_p13 }
  0x81   : > { %p3270_p6 = pnand %p3269_p2, %p3263_p0 }
  0x83   : > { %3273 = shalt.err (!%p3270_p6)
}
  0x84   : > { %3083 = dma.hbm_to_vmem [thread:$0]  (!%p3535_p5), %s3960_s9, 4096, %s497_s1, [#allocation11], %s3995_s7, %s3995_s7, %s3389_s28  }
  0x85   : > { %s3392_s29 = smov [#allocation15]   ;;  %s3393_s19 = smov [#allocation16]  }
  0x86   : > { %s528_s22 = sshll.u32 %s3392_s29, 4  ;;  %s544_s6 = sshll.u32 %s3393_s19, 4  ;;  %s529_s22 = int_to_ptr.vmem [resolvable:$true] %s528_s22  ;;  %s545_s6 = int_to_ptr.vmem [resolvable:$true] %s544_s6 }
  0x87   : > { %s3274_s14 = scalar_lea.hbm %s3964_s13, 4096 }
  0x88   : > { %p3275_p3 = scmp.ne.s32.totalorder %s3964_s13, %s3274_s14  ;;  %p3281_p10 = scmp.lt.u32.totalorder %s3274_s14, %s3964_s13 }
  0x8a   : > { %p3277_p8 = pnand %p3275_p3, %p3547_p7 }
  0x8c   : > { %p3278_p9 = pneg %p3277_p8 }
  0x8e   : > { %p3283_p11 = pnand %p3281_p10, %p3278_p9 }
  0x90   : > { %3286 = shalt.err (!%p3283_p11)
}
  0x91   : > { %s3287_s1 = scalar_lea.vmem %s529_s22, 4096  ;;  %p3295_p1 = scmp.lt.s32.totalorder %s529_s22, %s529_s22 }
  0x92   : > { %p3288_p12 = scmp.ne.s32.totalorder %s529_s22, %s3287_s1  ;;  %p3296_p4 = scmp.lt.s32.totalorder %s3287_s1, %s3287_s1 }
  0x94   : > { %p3290_p13 = pnand %p3288_p12, %p3547_p7  ;;  %p3297_p2 = por %p3296_p4, %p3295_p1 }
  0x96   : > { %p3291_p0 = pneg %p3290_p13 }
  0x98   : > { %p3298_p6 = pnand %p3297_p2, %p3291_p0 }
  0x9a   : > { %3301 = shalt.err (!%p3298_p6)
}
  0x9b   : > { %3089 = dma.hbm_to_vmem [thread:$0]  (!%p3535_p5), %s3964_s13, 4096, %s529_s22, [#allocation14], %s3995_s7, %s3995_s7, %s3389_s28  }
  0x9c   : > { %s3302_s19 = scalar_lea.hbm %s3966_s15, 2048 }
  0x9d   : > { %p3303_p3 = scmp.ne.s32.totalorder %s3966_s15, %s3302_s19  ;;  %p3309_p10 = scmp.lt.u32.totalorder %s3302_s19, %s3966_s15 }
  0x9f   : > { %p3305_p8 = pnand %p3303_p3, %p3547_p7 }
  0xa1   : > { %p3306_p9 = pneg %p3305_p8 }
  0xa3   : > { %p3311_p11 = pnand %p3309_p10, %p3306_p9 }
  0xa5   : > { %3314 = shalt.err (!%p3311_p11)
}
  0xa6   : > { %s3315_s11 = scalar_lea.vmem %s545_s6, 2048  ;;  %p3323_p1 = scmp.lt.s32.totalorder %s545_s6, %s545_s6 }
  0xa7   : > { %p3316_p12 = scmp.ne.s32.totalorder %s545_s6, %s3315_s11  ;;  %p3324_p4 = scmp.lt.s32.totalorder %s3315_s11, %s3315_s11 }
  0xa9   : > { %p3318_p13 = pnand %p3316_p12, %p3547_p7  ;;  %p3325_p2 = por %p3324_p4, %p3323_p1 }
  0xab   : > { %p3319_p0 = pneg %p3318_p13 }
  0xad   : > { %p3326_p6 = pnand %p3325_p2, %p3319_p0 }
  0xaf   : > { %3329 = shalt.err (!%p3326_p6)
}
  0xb0   : > { %3092 = dma.hbm_to_vmem [thread:$0]  (!%p3535_p5), %s3966_s15, 2048, %s545_s6, [#allocation17], %s3995_s7, %s3995_s7, %s3389_s28  }
  0xb1   : > { %p3998_p3 = scmp.ne.s32.totalorder %s3989_s30, 0 }
  0xb2   : > { %p3999_p7 = scmp.ne.s32.totalorder (!%p3998_p3), %s3988_s0, 0 }
  0xb3   : > { %574 = sbr.rel (%p3998_p3) target bundleno = 1778 (0x6f2), region = 88 }
  0xba   : > { %3351 = dma.done.wait (%p3999_p7), [#allocation9], 4096  }
  0xbb   : > { %3353 = vsyncadd (%p3999_p7), [#allocation9], 4294963200 }
  0xbc   : > { %3355 = dma.done.wait (%p3999_p7), [#allocation11], 8192  }
  0xbd   : > { %3357 = vsyncadd (%p3999_p7), [#allocation11], 4294959104 }
  0xbe   : > { %3359 = dma.done.wait (%p3999_p7), [#allocation14], 8192  }
  0xbf   : > { %3361 = vsyncadd (%p3999_p7), [#allocation14], 4294959104 }
  0xc0   : > { %3363 = dma.done.wait (%p3999_p7), [#allocation17], 2048  }
  0xc1   : > { %3365 = vsyncadd (%p3999_p7), [#allocation17], 4294965248  ;;  %p652_p5 = scmp.lt.s32.totalorder %s3372_s25, 1  ;;  %p654_p8 = scmp.lt.s32.totalorder %s3368_s24, 1 }
  0xc2   : > { %s4000_s3 = sld [smem:[#allocation24_spill]]  ;;  %p2164_p9 = scmp.ne.s32.totalorder %s3368_s24, 0 }
  0xc3   : > { %s4021_s25 = smov (!%p652_p5, %s3372_s25), 1  ;;  %vm673_vm0 = vcmask (!%p2164_p9), 24576   ;;  %v3394_v1 = vmov (!%p2164_p9), 0.0  }
  0xc4   : > { %s655_s30 = scalar_select %p654_p8, %s3368_s24, 1 }
  0xc5   : > { %s2160_s21 = sshll.u32 %s4021_s25, 1  ;;  %672 = sbr.rel (%p2164_p9) target bundleno = 204 (0xcc), region = 116  ;;  %674 = vst.msk [vmem:[#allocation2] sm:$0x1] (!%p2164_p9), %vm673_vm0, %v3394_v1 }
  0xc6   : > { %s657_s18 = sadd.s32 %s2160_s21, %s655_s30 }
  0xc7   : > { %s2161_s28 = sshll.u32 %s657_s18, 3 }
  0xc8   : > { %s659_s12 = scalar_lea.vmem %s4000_s3, %s2161_s28  ;;  %s3712_s0 = scalar_lea.vmem %s3968_s17, %s2161_s28 }
  0xc9   : > { %v3714_v0 = vld [vmem:[%s659_s12] sm:$0xff] }
  0xcc PF: > { %p2165_p10 = scmp.le.s32.totalorder %s3368_s24, 0 }
  0xcd   : > { %v679_v2 = vld [vmem:[#allocation2 + $0x8] sm:$0x1] (!%p2165_p10)  ;;  %vm680_vm1 = vcmask (!%p2165_p10), 24576  }
  0xce   : > { %678 = sbr.rel (%p2165_p10) target bundleno = 213 (0xd5), region = 120  ;;  %681 = vst.msk [vmem:[#allocation2] sm:$0x1] (!%p2165_p10), %vm680_vm1, %v679_v2 }
  0xd5 PF: > { %s4001_s8 = sld [smem:[#allocation25_spill]]  ;;  %vm691_vm2 = vcmask 1043456   ;;  %vm682_vm3 = vcmask 31744   ;;  %v3395_v4 = vmov 0.0   ;;  %vm3396_vm4 = vmmov 0  }
  0xd6   : > { %2386 = vmatprep.subr.mxu0 %v3395_v4  ;;  %2388 = vmatprep.mubr.msk.f32.mxu0 %vm3396_vm4, %v3395_v4  ;;  %683 = vst.msk [vmem:[#allocation2 + $0x1] sm:$0xff] %vm682_vm3, %v3714_v0  ;;  %v2171_v10 = vld [vmem:[%s3953_s2] ss:$0 sm:$0xff]  ;;  %v3397_v15 = vmov (!%p2164_p9), 0.0  }
  0xd7   : > { %853 = vst [vmem:[#allocation3] sm:$0x1] (!%p2164_p9), %v3397_v15 }
  0xdb   : > { %v2166_v3 = vld [vmem:[%s4001_s8 + $0x4] sm:$0xf]  ;;  %v685_v5 = vld [vmem:[%s4001_s8] sm:$0xf] }
  0xdc   : > { %2387 = vmatpush3.msk.msra.mxu0 %vm691_vm2, %v2166_v3 }
  0xdd   : > { %2389 = vmatmul.mubr.msk.f32.vlgmr.msra.gmra.mrb[0].mxu0 %vm682_vm3, %v3714_v0  ;;  %2391 = vmatprep.subr.mxu0 %v3395_v4  ;;  %v684_v6 = vld [vmem:[#allocation2] sm:$0xff] }
  0xde   : > { %2392 = vmatpush3.msk.msra.mxu0 %vm691_vm2, %v685_v5  ;;  %2393 = vmatprep.mubr.msk.f32.mxu0 %vm3396_vm4, %v3395_v4 }
  0xe1   : > { %2394 = vmatmul.mubr.msk.f32.vlgmr.msra.gmra.mrb[2].mxu0 %vm682_vm3, %v684_v6 }
 0x1b0   : > { %v761_v7 = vpop.f32.mrb[0].mxu0 }
 0x1b1   : > { %v2390_v8 = vpop.f32.mrb[1].mxu0 }
 0x1b3   : > { %852 = sbr.rel (%p2164_p9) target bundleno = 442 (0x1ba), region = 124 }
 0x1b4   : > { %v837_v9 = vpop.f32.mrb[2].mxu0 }
 0x1b5   : > { %v838_v11 = vadd.f32 %v837_v9, %v761_v7  ;;  %v2395_v12 = vpop.f32.mrb[3].mxu0 }
 0x1b7   : > { %v3744_v13 = vadd.f32 %v2171_v10, %v838_v11 }
 0x1b9   : > { %v849_v14 = vmax.f32 %v3744_v13, 0.0 }
 0x1ba PF: > { %856 = sbr.rel (%p2165_p10) target bundleno = 449 (0x1c1), region = 128  ;;  %v857_v16 = vld [vmem:[#allocation3 + $0x8] sm:$0x1] (!%p2165_p10) }
 0x1bb   : > { %858 = vst [vmem:[#allocation3] sm:$0x1] (!%p2165_p10), %v857_v16 }
 0x1c1 PF: > { %v878_v17 = vld [vmem:[#allocation8 + $0x80] sm:$0xff]  ;;  %v879_v18 = vld [vmem:[#allocation8 + $0x88] sm:$0xff]  ;;  %2428 = vmatprep.mubr.msk.f32.mxu0 %vm3396_vm4, %v3395_v4  ;;  %2463 = vmatprep.mubr.msk.f32.mxu1 %vm3396_vm4, %v3395_v4  ;;  %859 = vst [vmem:[#allocation3 + $0x1] sm:$0xff] %v849_v14  ;;  %v3398_v20 = vmov 0.0|0.0   ;;  %v880_v23 = vld [vmem:[#allocation8 + $0x90] sm:$0xff]  ;;  %s4002_s7 = sld [smem:[#allocation27_spill]] }
 0x1c2   : > { %v861_v19 = vld [vmem:[#allocation8] sm:$0xff]  ;;  %2786 = vmatprep.subr.bf16.mxu0 %v3398_v20  ;;  %2810 = vmatprep.subr.bf16.mxu1 %v3398_v20  ;;  %v2787_v21 = vpack.c.bf16 %v879_v18, %v878_v17  ;;  %v862_v22 = vld [vmem:[#allocation8 + $0x8] sm:$0xff]  ;;  %v881_v24 = vld [vmem:[#allocation8 + $0x98] sm:$0xff] }
 0x1c3   : > { %v2811_v25 = vpack.c.bf16 %v862_v22, %v861_v19  ;;  %v863_v26 = vld [vmem:[#allocation8 + $0x10] sm:$0xff]  ;;  %v864_v27 = vld [vmem:[#allocation8 + $0x18] sm:$0xff]  ;;  %v2790_v28 = vpack.c.bf16 %v881_v24, %v880_v23  ;;  %v882_v30 = vld [vmem:[#allocation8 + $0xa0] sm:$0xff]  ;;  %v3399_v19 = vmov (!%p2164_p9), 0.0  }
 0x1c4   : > { %2788 = vmatpush3.bf16.msra.mxu0 %v2787_v21  ;;  %v2814_v29 = vpack.c.bf16 %v864_v27, %v863_v26  ;;  %v883_v31 = vld [vmem:[#allocation8 + $0xa8] sm:$0xff]  ;;  %v865_v32 = vld [vmem:[#allocation8 + $0x20] sm:$0xff]  ;;  %v884_v36 = vld [vmem:[#allocation8 + $0xb0] sm:$0xff]  ;;  %1129 = vst [vmem:[#allocation4] sm:$0x3] (!%p2164_p9), %v3399_v19 }
 0x1c5   : > { %2812 = vmatpush3.bf16.msra.mxu1 %v2811_v25  ;;  %2789 = vmatprep.subr.bf16.mxu0 %v3398_v20  ;;  %v866_v33 = vld [vmem:[#allocation8 + $0x28] sm:$0xff]  ;;  %v2793_v34 = vpack.c.bf16 %v883_v31, %v882_v30  ;;  %v885_v37 = vld [vmem:[#allocation8 + $0xb8] sm:$0xff]  ;;  %v867_v38 = vld [vmem:[#allocation8 + $0x30] sm:$0xff] }
 0x1c6   : > { %2813 = vmatprep.subr.bf16.mxu1 %v3398_v20  ;;  %v2817_v35 = vpack.c.bf16 %v866_v33, %v865_v32  ;;  %v868_v39 = vld [vmem:[#allocation8 + $0x38] sm:$0xff]  ;;  %v2796_v40 = vpack.c.bf16 %v885_v37, %v884_v36  ;;  %v886_v42 = vld [vmem:[#allocation8 + $0xc0] sm:$0xff]  ;;  %v887_v43 = vld [vmem:[#allocation8 + $0xc8] sm:$0xff] }
 0x1c7   : > { %v2820_v41 = vpack.c.bf16 %v868_v39, %v867_v38  ;;  %v869_v44 = vld [vmem:[#allocation8 + $0x40] sm:$0xff]  ;;  %v870_v45 = vld [vmem:[#allocation8 + $0x48] sm:$0xff]  ;;  %v2799_v46 = vpack.c.bf16 %v887_v43, %v886_v42  ;;  %v888_v48 = vld [vmem:[#allocation8 + $0xd0] sm:$0xff] }
 0x1c8   : > { %2791 = vmatpush3.bf16.msra.mxu0 %v2790_v28  ;;  %v2823_v47 = vpack.c.bf16 %v870_v45, %v869_v44  ;;  %v889_v49 = vld [vmem:[#allocation8 + $0xd8] sm:$0xff]  ;;  %v871_v50 = vld [vmem:[#allocation8 + $0x50] sm:$0xff]  ;;  %v890_v54 = vld [vmem:[#allocation8 + $0xe0] sm:$0xff] }
 0x1c9   : > { %2815 = vmatpush3.bf16.msra.mxu1 %v2814_v29  ;;  %2792 = vmatprep.subr.bf16.mxu0 %v3398_v20  ;;  %v872_v51 = vld [vmem:[#allocation8 + $0x58] sm:$0xff]  ;;  %v2802_v52 = vpack.c.bf16 %v889_v49, %v888_v48  ;;  %v891_v55 = vld [vmem:[#allocation8 + $0xe8] sm:$0xff]  ;;  %v873_v56 = vld [vmem:[#allocation8 + $0x60] sm:$0xff] }
 0x1ca   : > { %2816 = vmatprep.subr.bf16.mxu1 %v3398_v20  ;;  %v2826_v53 = vpack.c.bf16 %v872_v51, %v871_v50  ;;  %v874_v57 = vld [vmem:[#allocation8 + $0x68] sm:$0xff]  ;;  %v2805_v58 = vpack.c.bf16 %v891_v55, %v890_v54  ;;  %v892_v60 = vld [vmem:[#allocation8 + $0xf0] sm:$0xff]  ;;  %v893_v61 = vld [vmem:[#allocation8 + $0xf8] sm:$0xff] }
 0x1cb   : > { %v2829_v59 = vpack.c.bf16 %v874_v57, %v873_v56  ;;  %v875_v62 = vld [vmem:[#allocation8 + $0x70] sm:$0xff]  ;;  %v876_v63 = vld [vmem:[#allocation8 + $0x78] sm:$0xff]  ;;  %v2808_v1 = vpack.c.bf16 %v893_v61, %v892_v60  ;;  %v1043_v5 = vld [vmem:[%s3956_s5] sm:$0xf] }
 0x1cc   : > { %2794 = vmatpush3.bf16.msra.mxu0 %v2793_v34  ;;  %v2832_v2 = vpack.c.bf16 %v876_v63, %v875_v62  ;;  %v860_v3 = vld [vmem:[#allocation3] sm:$0xff]  ;;  %v2174_v8 = vld [vmem:[%s3955_s4] ss:$0 sm:$0xff] }
 0x1cd   : > { %2818 = vmatpush3.bf16.msra.mxu1 %v2817_v35  ;;  %2795 = vmatprep.subr.bf16.mxu0 %v3398_v20  ;;  %v2175_v12 = vld [vmem:[%s4002_s7] ss:$0 sm:$0xff] }
 0x1ce   : > { %2819 = vmatprep.subr.bf16.mxu1 %v3398_v20 }
 0x1d0   : > { %2797 = vmatpush3.bf16.msra.mxu0 %v2796_v40 }
 0x1d1   : > { %2821 = vmatpush3.bf16.msra.mxu1 %v2820_v41  ;;  %2798 = vmatprep.subr.bf16.mxu0 %v3398_v20 }
 0x1d2   : > { %2822 = vmatprep.subr.bf16.mxu1 %v3398_v20 }
 0x1d4   : > { %2800 = vmatpush3.bf16.msra.mxu0 %v2799_v46 }
 0x1d5   : > { %2824 = vmatpush3.bf16.msra.mxu1 %v2823_v47  ;;  %2801 = vmatprep.subr.bf16.mxu0 %v3398_v20 }
 0x1d6   : > { %2825 = vmatprep.subr.bf16.mxu1 %v3398_v20 }
 0x1d8   : > { %2803 = vmatpush3.bf16.msra.mxu0 %v2802_v52 }
 0x1d9   : > { %2827 = vmatpush3.bf16.msra.mxu1 %v2826_v53  ;;  %2804 = vmatprep.subr.bf16.mxu0 %v3398_v20 }
 0x1da   : > { %2828 = vmatprep.subr.bf16.mxu1 %v3398_v20 }
 0x1dc   : > { %2806 = vmatpush3.bf16.msra.mxu0 %v2805_v58 }
 0x1dd   : > { %2830 = vmatpush3.bf16.msra.mxu1 %v2829_v59  ;;  %2807 = vmatprep.subr.bf16.mxu0 %v3398_v20 }
 0x1de   : > { %2831 = vmatprep.subr.bf16.mxu1 %v3398_v20 }
 0x1e0   : > { %2809 = vmatpush3.bf16.msra.mxu0 %v2808_v1 }
 0x1e1   : > { %2833 = vmatpush3.bf16.msra.mxu1 %v2832_v2  ;;  %2466 = vmatprep.subr.mxu0 %v3395_v4 }
 0x1e3   : > { %2429 = vmatmul.mubr.f32.vlgmr.msra.gmra.mrb[4].mxu0 %v849_v14 }
 0x1e4   : > { %2464 = vmatmul.mubr.f32.vlgmr.msra.gmra.mrb[0].mxu1 %v860_v3  ;;  %2467 = vmatpush3.msk.msra.mxu0 %vm691_vm2, %v1043_v5 }
 0x1e5   : > { %2468 = vmatprep.mubr.msk.f32.mxu0 %vm3396_vm4, %v3395_v4 }
 0x1e7   : > { %2469 = vmatmul.mubr.msk.f32.vlgmr.msra.gmra.mrb[6].mxu0 %vm682_vm3, %v3714_v0 }
 0x2b6   : > { %v960_v6 = vpop.f32.mrb[4].mxu0 }
 0x2b7   : > { %v1030_v7 = vpop.f32.mrb[0].mxu1  ;;  %v2430_v9 = vpop.f32.mrb[5].mxu0 }
 0x2b8   : > { %v1031_v10 = vadd.f32 %v1030_v7, %v960_v6  ;;  %v2465_v11 = vpop.f32.mrb[1].mxu1 }
 0x2ba   : > { %v1041_v13 = vadd.f32 %v2174_v8, %v1031_v10  ;;  %v1120_v14 = vpop.f32.mrb[6].mxu0  ;;  %1128 = sbr.rel (%p2164_p9) target bundleno = 705 (0x2c1), region = 132 }
 0x2bb   : > { %v1121_v15 = vadd.f32 %v2175_v12, %v1120_v14  ;;  %v2470_v16 = vpop.f32.mrb[7].mxu0 }
 0x2bc   : > { %v1042_v17 = vmax.f32 %v1041_v13, 0.0 }
 0x2be   : > { %v1124_v18 = vadd.f32 %v1121_v15, %v1042_v17 }
 0x2c0   : > { %v3790_v0 = vmax.f32 %v1124_v18, 0.0 }
 0x2c1 PF: > { %1132 = sbr.rel (%p2165_p10) target bundleno = 712 (0x2c8), region = 136  ;;  %v1133_v21 = vld [vmem:[#allocation4 + $0x8] sm:$0x3] (!%p2165_p10) }
 0x2c2   : > { %1134 = vst [vmem:[#allocation4] sm:$0x3] (!%p2165_p10), %v1133_v21 }
 0x2c8 PF: > { %2834 = vmatprep.subr.bf16.mxu1 %v3398_v20  ;;  %2858 = vmatprep.subr.bf16.mxu0 %v3398_v20  ;;  %v1154_v22 = vld [vmem:[#allocation10 + $0x80] sm:$0xff]  ;;  %v1155_v23 = vld [vmem:[#allocation10 + $0x88] sm:$0xff]  ;;  %1135 = vst [vmem:[#allocation4 + $0x2] sm:$0xff] %v3790_v0  ;;  %v1156_v27 = vld [vmem:[#allocation10 + $0x90] sm:$0xff]  ;;  %s4003_s12 = sld [smem:[#allocation29_spill]]  ;;  %v3400_v17 = vmov (!%p2164_p9), 0.0  }
 0x2c9   : > { %v1137_v24 = vld [vmem:[#allocation10] sm:$0xff]  ;;  %v2835_v25 = vpack.c.bf16 %v1155_v23, %v1154_v22  ;;  %v1138_v26 = vld [vmem:[#allocation10 + $0x8] sm:$0xff]  ;;  %v1157_v28 = vld [vmem:[#allocation10 + $0x98] sm:$0xff]  ;;  %2503 = vmatprep.mubr.msk.f32.mxu1 %vm3396_vm4, %v3395_v4  ;;  %2538 = vmatprep.mubr.msk.f32.mxu0 %vm3396_vm4, %v3395_v4  ;;  %1322 = vst [vmem:[#allocation5] sm:$0x3] (!%p2164_p9), %v3400_v17 }
 0x2ca   : > { %v2859_v29 = vpack.c.bf16 %v1138_v26, %v1137_v24  ;;  %v1139_v30 = vld [vmem:[#allocation10 + $0x10] sm:$0xff]  ;;  %v1140_v31 = vld [vmem:[#allocation10 + $0x18] sm:$0xff]  ;;  %v2838_v32 = vpack.c.bf16 %v1157_v28, %v1156_v27  ;;  %v1158_v34 = vld [vmem:[#allocation10 + $0xa0] sm:$0xff] }
 0x2cb   : > { %2836 = vmatpush3.bf16.msra.mxu1 %v2835_v25  ;;  %v2862_v33 = vpack.c.bf16 %v1140_v31, %v1139_v30  ;;  %v1159_v35 = vld [vmem:[#allocation10 + $0xa8] sm:$0xff]  ;;  %v1141_v36 = vld [vmem:[#allocation10 + $0x20] sm:$0xff]  ;;  %v1160_v40 = vld [vmem:[#allocation10 + $0xb0] sm:$0xff] }
 0x2cc   : > { %2860 = vmatpush3.bf16.msra.mxu0 %v2859_v29  ;;  %2837 = vmatprep.subr.bf16.mxu1 %v3398_v20  ;;  %v1142_v37 = vld [vmem:[#allocation10 + $0x28] sm:$0xff]  ;;  %v2841_v38 = vpack.c.bf16 %v1159_v35, %v1158_v34  ;;  %v1161_v41 = vld [vmem:[#allocation10 + $0xb8] sm:$0xff]  ;;  %v1143_v42 = vld [vmem:[#allocation10 + $0x30] sm:$0xff] }
 0x2cd   : > { %2861 = vmatprep.subr.bf16.mxu0 %v3398_v20  ;;  %v2865_v39 = vpack.c.bf16 %v1142_v37, %v1141_v36  ;;  %v1144_v43 = vld [vmem:[#allocation10 + $0x38] sm:$0xff]  ;;  %v2844_v44 = vpack.c.bf16 %v1161_v41, %v1160_v40  ;;  %v1162_v46 = vld [vmem:[#allocation10 + $0xc0] sm:$0xff]  ;;  %v1163_v47 = vld [vmem:[#allocation10 + $0xc8] sm:$0xff] }
 0x2ce   : > { %v2868_v45 = vpack.c.bf16 %v1144_v43, %v1143_v42  ;;  %v1145_v48 = vld [vmem:[#allocation10 + $0x40] sm:$0xff]  ;;  %v1146_v49 = vld [vmem:[#allocation10 + $0x48] sm:$0xff]  ;;  %v2847_v50 = vpack.c.bf16 %v1163_v47, %v1162_v46  ;;  %v1164_v52 = vld [vmem:[#allocation10 + $0xd0] sm:$0xff] }
 0x2cf   : > { %2839 = vmatpush3.bf16.msra.mxu1 %v2838_v32  ;;  %v2871_v51 = vpack.c.bf16 %v1146_v49, %v1145_v48  ;;  %v1165_v53 = vld [vmem:[#allocation10 + $0xd8] sm:$0xff]  ;;  %v1147_v54 = vld [vmem:[#allocation10 + $0x50] sm:$0xff]  ;;  %v1166_v58 = vld [vmem:[#allocation10 + $0xe0] sm:$0xff] }
 0x2d0   : > { %2863 = vmatpush3.bf16.msra.mxu0 %v2862_v33  ;;  %2840 = vmatprep.subr.bf16.mxu1 %v3398_v20  ;;  %v1148_v55 = vld [vmem:[#allocation10 + $0x58] sm:$0xff]  ;;  %v2850_v56 = vpack.c.bf16 %v1165_v53, %v1164_v52  ;;  %v1167_v59 = vld [vmem:[#allocation10 + $0xe8] sm:$0xff]  ;;  %v1149_v60 = vld [vmem:[#allocation10 + $0x60] sm:$0xff] }
 0x2d1   : > { %2864 = vmatprep.subr.bf16.mxu0 %v3398_v20  ;;  %v2874_v57 = vpack.c.bf16 %v1148_v55, %v1147_v54  ;;  %v1150_v61 = vld [vmem:[#allocation10 + $0x68] sm:$0xff]  ;;  %v2853_v62 = vpack.c.bf16 %v1167_v59, %v1166_v58  ;;  %v1168_v1 = vld [vmem:[#allocation10 + $0xf0] sm:$0xff]  ;;  %v1169_v2 = vld [vmem:[#allocation10 + $0xf8] sm:$0xff] }
 0x2d2   : > { %v2877_v63 = vpack.c.bf16 %v1150_v61, %v1149_v60  ;;  %v1151_v3 = vld [vmem:[#allocation10 + $0x70] sm:$0xff]  ;;  %v1152_v5 = vld [vmem:[#allocation10 + $0x78] sm:$0xff]  ;;  %v2856_v6 = vpack.c.bf16 %v1169_v2, %v1168_v1  ;;  %v1136_v8 = vld [vmem:[#allocation4] sm:$0xff] }
 0x2d3   : > { %2842 = vmatpush3.bf16.msra.mxu1 %v2841_v38  ;;  %v2880_v7 = vpack.c.bf16 %v1152_v5, %v1151_v3  ;;  %v2180_v11 = vld [vmem:[%s4003_s12] ss:$0 sm:$0xff] }
 0x2d4   : > { %2866 = vmatpush3.bf16.msra.mxu0 %v2865_v39  ;;  %2843 = vmatprep.subr.bf16.mxu1 %v3398_v20 }
 0x2d5   : > { %2867 = vmatprep.subr.bf16.mxu0 %v3398_v20 }
 0x2d7   : > { %2845 = vmatpush3.bf16.msra.mxu1 %v2844_v44 }
 0x2d8   : > { %2869 = vmatpush3.bf16.msra.mxu0 %v2868_v45  ;;  %2846 = vmatprep.subr.bf16.mxu1 %v3398_v20 }
 0x2d9   : > { %2870 = vmatprep.subr.bf16.mxu0 %v3398_v20 }
 0x2db   : > { %2848 = vmatpush3.bf16.msra.mxu1 %v2847_v50 }
 0x2dc   : > { %2872 = vmatpush3.bf16.msra.mxu0 %v2871_v51  ;;  %2849 = vmatprep.subr.bf16.mxu1 %v3398_v20 }
 0x2dd   : > { %2873 = vmatprep.subr.bf16.mxu0 %v3398_v20 }
 0x2df   : > { %2851 = vmatpush3.bf16.msra.mxu1 %v2850_v56 }
 0x2e0   : > { %2875 = vmatpush3.bf16.msra.mxu0 %v2874_v57  ;;  %2852 = vmatprep.subr.bf16.mxu1 %v3398_v20 }
 0x2e1   : > { %2876 = vmatprep.subr.bf16.mxu0 %v3398_v20 }
 0x2e3   : > { %2854 = vmatpush3.bf16.msra.mxu1 %v2853_v62 }
 0x2e4   : > { %2878 = vmatpush3.bf16.msra.mxu0 %v2877_v63  ;;  %2855 = vmatprep.subr.bf16.mxu1 %v3398_v20 }
 0x2e5   : > { %2879 = vmatprep.subr.bf16.mxu0 %v3398_v20 }
 0x2e7   : > { %2857 = vmatpush3.bf16.msra.mxu1 %v2856_v6 }
 0x2e8   : > { %2881 = vmatpush3.bf16.msra.mxu0 %v2880_v7 }
 0x2ea   : > { %2504 = vmatmul.mubr.f32.vlgmr.msra.gmra.mrb[2].mxu1 %v3790_v0 }
 0x2eb   : > { %2539 = vmatmul.mubr.f32.vlgmr.msra.gmra.mrb[8].mxu0 %v1136_v8 }
 0x3bd   : > { %v1236_v9 = vpop.f32.mrb[2].mxu1  ;;  %1321 = sbr.rel (%p2164_p9) target bundleno = 964 (0x3c4), region = 140 }
 0x3be   : > { %v1306_v10 = vpop.f32.mrb[8].mxu0  ;;  %v2505_v12 = vpop.f32.mrb[3].mxu1 }
 0x3bf   : > { %v1307_v13 = vadd.f32 %v1306_v10, %v1236_v9  ;;  %v2540_v14 = vpop.f32.mrb[9].mxu0 }
 0x3c1   : > { %v3821_v15 = vadd.f32 %v2180_v11, %v1307_v13 }
 0x3c3   : > { %v1318_v16 = vmax.f32 %v3821_v15, 0.0 }
 0x3c4 PF: > { %1325 = sbr.rel (%p2165_p10) target bundleno = 971 (0x3cb), region = 144  ;;  %v1326_v18 = vld [vmem:[#allocation5 + $0x8] sm:$0x3] (!%p2165_p10) }
 0x3c5   : > { %1327 = vst [vmem:[#allocation5] sm:$0x3] (!%p2165_p10), %v1326_v18 }
 0x3cb PF: > { %2882 = vmatprep.subr.bf16.mxu1 %v3398_v20  ;;  %2906 = vmatprep.subr.bf16.mxu0 %v3398_v20  ;;  %v1347_v19 = vld [vmem:[#allocation12 + $0x80] sm:$0xff]  ;;  %v1348_v21 = vld [vmem:[#allocation12 + $0x88] sm:$0xff]  ;;  %1328 = vst [vmem:[#allocation5 + $0x2] sm:$0xff] %v1318_v16  ;;  %v1349_v25 = vld [vmem:[#allocation12 + $0x90] sm:$0xff]  ;;  %s4004_s25 = sld [smem:[#allocation30_spill]]  ;;  %v3401_v15 = vmov (!%p2164_p9), 0.0  }
 0x3cc   : > { %v1330_v22 = vld [vmem:[#allocation12] sm:$0xff]  ;;  %v2883_v23 = vpack.c.bf16 %v1348_v21, %v1347_v19  ;;  %v1331_v24 = vld [vmem:[#allocation12 + $0x8] sm:$0xff]  ;;  %v1350_v26 = vld [vmem:[#allocation12 + $0x98] sm:$0xff]  ;;  %2573 = vmatprep.mubr.msk.f32.mxu1 %vm3396_vm4, %v3395_v4  ;;  %2608 = vmatprep.mubr.msk.f32.mxu0 %vm3396_vm4, %v3395_v4  ;;  %1517 = vst [vmem:[#allocation6] sm:$0xf] (!%p2164_p9), %v3401_v15 }
 0x3cd   : > { %v2907_v27 = vpack.c.bf16 %v1331_v24, %v1330_v22  ;;  %v1332_v28 = vld [vmem:[#allocation12 + $0x10] sm:$0xff]  ;;  %v1333_v29 = vld [vmem:[#allocation12 + $0x18] sm:$0xff]  ;;  %v2886_v30 = vpack.c.bf16 %v1350_v26, %v1349_v25  ;;  %v1351_v32 = vld [vmem:[#allocation12 + $0xa0] sm:$0xff] }
 0x3ce   : > { %2884 = vmatpush3.bf16.msra.mxu1 %v2883_v23  ;;  %v2910_v31 = vpack.c.bf16 %v1333_v29, %v1332_v28  ;;  %v1352_v33 = vld [vmem:[#allocation12 + $0xa8] sm:$0xff]  ;;  %v1334_v34 = vld [vmem:[#allocation12 + $0x20] sm:$0xff]  ;;  %v1353_v38 = vld [vmem:[#allocation12 + $0xb0] sm:$0xff] }
 0x3cf   : > { %2908 = vmatpush3.bf16.msra.mxu0 %v2907_v27  ;;  %2885 = vmatprep.subr.bf16.mxu1 %v3398_v20  ;;  %v1335_v35 = vld [vmem:[#allocation12 + $0x28] sm:$0xff]  ;;  %v2889_v36 = vpack.c.bf16 %v1352_v33, %v1351_v32  ;;  %v1354_v39 = vld [vmem:[#allocation12 + $0xb8] sm:$0xff]  ;;  %v1336_v40 = vld [vmem:[#allocation12 + $0x30] sm:$0xff] }
 0x3d0   : > { %2909 = vmatprep.subr.bf16.mxu0 %v3398_v20  ;;  %v2913_v37 = vpack.c.bf16 %v1335_v35, %v1334_v34  ;;  %v1337_v41 = vld [vmem:[#allocation12 + $0x38] sm:$0xff]  ;;  %v2892_v42 = vpack.c.bf16 %v1354_v39, %v1353_v38  ;;  %v1355_v44 = vld [vmem:[#allocation12 + $0xc0] sm:$0xff]  ;;  %v1356_v45 = vld [vmem:[#allocation12 + $0xc8] sm:$0xff] }
 0x3d1   : > { %v2916_v43 = vpack.c.bf16 %v1337_v41, %v1336_v40  ;;  %v1338_v46 = vld [vmem:[#allocation12 + $0x40] sm:$0xff]  ;;  %v1339_v47 = vld [vmem:[#allocation12 + $0x48] sm:$0xff]  ;;  %v2895_v48 = vpack.c.bf16 %v1356_v45, %v1355_v44  ;;  %v1357_v50 = vld [vmem:[#allocation12 + $0xd0] sm:$0xff] }
 0x3d2   : > { %2887 = vmatpush3.bf16.msra.mxu1 %v2886_v30  ;;  %v2919_v49 = vpack.c.bf16 %v1339_v47, %v1338_v46  ;;  %v1358_v51 = vld [vmem:[#allocation12 + $0xd8] sm:$0xff]  ;;  %v1340_v52 = vld [vmem:[#allocation12 + $0x50] sm:$0xff]  ;;  %v1359_v56 = vld [vmem:[#allocation12 + $0xe0] sm:$0xff] }
 0x3d3   : > { %2911 = vmatpush3.bf16.msra.mxu0 %v2910_v31  ;;  %2888 = vmatprep.subr.bf16.mxu1 %v3398_v20  ;;  %v1341_v53 = vld [vmem:[#allocation12 + $0x58] sm:$0xff]  ;;  %v2898_v54 = vpack.c.bf16 %v1358_v51, %v1357_v50  ;;  %v1360_v57 = vld [vmem:[#allocation12 + $0xe8] sm:$0xff]  ;;  %v1342_v58 = vld [vmem:[#allocation12 + $0x60] sm:$0xff] }
 0x3d4   : > { %2912 = vmatprep.subr.bf16.mxu0 %v3398_v20  ;;  %v2922_v55 = vpack.c.bf16 %v1341_v53, %v1340_v52  ;;  %v1343_v59 = vld [vmem:[#allocation12 + $0x68] sm:$0xff]  ;;  %v2901_v60 = vpack.c.bf16 %v1360_v57, %v1359_v56  ;;  %v1361_v62 = vld [vmem:[#allocation12 + $0xf0] sm:$0xff]  ;;  %v1362_v63 = vld [vmem:[#allocation12 + $0xf8] sm:$0xff] }
 0x3d5   : > { %v2925_v61 = vpack.c.bf16 %v1343_v59, %v1342_v58  ;;  %v1344_v1 = vld [vmem:[#allocation12 + $0x70] sm:$0xff]  ;;  %v1345_v2 = vld [vmem:[#allocation12 + $0x78] sm:$0xff]  ;;  %v2904_v3 = vpack.c.bf16 %v1362_v63, %v1361_v62  ;;  %v2183_v9 = vld [vmem:[%s4004_s25] ss:$0 sm:$0xff] }
 0x3d6   : > { %2890 = vmatpush3.bf16.msra.mxu1 %v2889_v36  ;;  %v2928_v5 = vpack.c.bf16 %v1345_v2, %v1344_v1  ;;  %v1329_v6 = vld [vmem:[#allocation5] sm:$0xff] }
 0x3d7   : > { %2914 = vmatpush3.bf16.msra.mxu0 %v2913_v37  ;;  %2891 = vmatprep.subr.bf16.mxu1 %v3398_v20 }
 0x3d8   : > { %2915 = vmatprep.subr.bf16.mxu0 %v3398_v20 }
 0x3da   : > { %2893 = vmatpush3.bf16.msra.mxu1 %v2892_v42 }
 0x3db   : > { %2917 = vmatpush3.bf16.msra.mxu0 %v2916_v43  ;;  %2894 = vmatprep.subr.bf16.mxu1 %v3398_v20 }
 0x3dc   : > { %2918 = vmatprep.subr.bf16.mxu0 %v3398_v20 }
 0x3de   : > { %2896 = vmatpush3.bf16.msra.mxu1 %v2895_v48 }
 0x3df   : > { %2920 = vmatpush3.bf16.msra.mxu0 %v2919_v49  ;;  %2897 = vmatprep.subr.bf16.mxu1 %v3398_v20 }
 0x3e0   : > { %2921 = vmatprep.subr.bf16.mxu0 %v3398_v20 }
 0x3e2   : > { %2899 = vmatpush3.bf16.msra.mxu1 %v2898_v54 }
 0x3e3   : > { %2923 = vmatpush3.bf16.msra.mxu0 %v2922_v55  ;;  %2900 = vmatprep.subr.bf16.mxu1 %v3398_v20 }
 0x3e4   : > { %2924 = vmatprep.subr.bf16.mxu0 %v3398_v20 }
 0x3e6   : > { %2902 = vmatpush3.bf16.msra.mxu1 %v2901_v60 }
 0x3e7   : > { %2926 = vmatpush3.bf16.msra.mxu0 %v2925_v61  ;;  %2903 = vmatprep.subr.bf16.mxu1 %v3398_v20 }
 0x3e8   : > { %2927 = vmatprep.subr.bf16.mxu0 %v3398_v20 }
 0x3ea   : > { %2905 = vmatpush3.bf16.msra.mxu1 %v2904_v3 }
 0x3eb   : > { %2929 = vmatpush3.bf16.msra.mxu0 %v2928_v5 }
 0x3ed   : > { %2574 = vmatmul.mubr.f32.vlgmr.msra.gmra.mrb[4].mxu1 %v1318_v16 }
 0x3ee   : > { %2609 = vmatmul.mubr.f32.vlgmr.msra.gmra.mrb[10].mxu0 %v1329_v6 }
 0x4c0   : > { %v1429_v7 = vpop.f32.mrb[4].mxu1 }
 0x4c1   : > { %v1499_v8 = vpop.f32.mrb[10].mxu0  ;;  %v2575_v10 = vpop.f32.mrb[5].mxu1 }
 0x4c2   : > { %v1500_v11 = vadd.f32 %v1499_v8, %v1429_v7  ;;  %v2610_v12 = vpop.f32.mrb[11].mxu0 }
 0x4c4   : > { %v1510_v13 = vadd.f32 %v2183_v9, %v1500_v11  ;;  %1516 = sbr.rel (%p2164_p9) target bundleno = 1227 (0x4cb), region = 148 }
 0x4c6   : > { %v1511_v14 = vmax.f32 %v1510_v13, 0.0 }
 0x4c8   : > { %v1512_v17 = vadd.f32 %v1511_v14, %v3790_v0 }
 0x4ca   : > { %v3856_v18 = vmax.f32 %v1512_v17, 0.0 }
 0x4cb PF: > { %1520 = sbr.rel (%p2165_p10) target bundleno = 1234 (0x4d2), region = 152  ;;  %v1521_v16 = vld [vmem:[#allocation6 + $0x8] sm:$0xf] (!%p2165_p10) }
 0x4cc   : > { %1522 = vst [vmem:[#allocation6] sm:$0xf] (!%p2165_p10), %v1521_v16 }
 0x4d2 PF: > { %2930 = vmatprep.subr.bf16.mxu1 %v3398_v20  ;;  %2954 = vmatprep.subr.bf16.mxu0 %v3398_v20  ;;  %v1542_v19 = vld [vmem:[#allocation13 + $0x80] sm:$0xff]  ;;  %v1543_v0 = vld [vmem:[#allocation13 + $0x88] sm:$0xff]  ;;  %1523 = vst [vmem:[#allocation6 + $0x4] sm:$0xff] %v3856_v18  ;;  %v1544_v24 = vld [vmem:[#allocation13 + $0x90] sm:$0xff]  ;;  %s4005_s14 = sld [smem:[#allocation32_spill]]  ;;  %v3402_v14 = vmov (!%p2164_p9), 0.0  }
 0x4d3   : > { %v1525_v21 = vld [vmem:[#allocation13] sm:$0xff]  ;;  %v2931_v22 = vpack.c.bf16 %v1543_v0, %v1542_v19  ;;  %v1526_v23 = vld [vmem:[#allocation13 + $0x8] sm:$0xff]  ;;  %v1545_v25 = vld [vmem:[#allocation13 + $0x98] sm:$0xff]  ;;  %2643 = vmatprep.mubr.msk.f32.mxu1 %vm3396_vm4, %v3395_v4  ;;  %2678 = vmatprep.mubr.msk.f32.mxu0 %vm3396_vm4, %v3395_v4  ;;  %1710 = vst [vmem:[#allocation7] sm:$0xf] (!%p2164_p9), %v3402_v14 }
 0x4d4   : > { %v2955_v26 = vpack.c.bf16 %v1526_v23, %v1525_v21  ;;  %v1527_v27 = vld [vmem:[#allocation13 + $0x10] sm:$0xff]  ;;  %v1528_v28 = vld [vmem:[#allocation13 + $0x18] sm:$0xff]  ;;  %v2934_v29 = vpack.c.bf16 %v1545_v25, %v1544_v24  ;;  %v1546_v31 = vld [vmem:[#allocation13 + $0xa0] sm:$0xff] }
 0x4d5   : > { %2932 = vmatpush3.bf16.msra.mxu1 %v2931_v22  ;;  %v2958_v30 = vpack.c.bf16 %v1528_v28, %v1527_v27  ;;  %v1547_v32 = vld [vmem:[#allocation13 + $0xa8] sm:$0xff]  ;;  %v1529_v33 = vld [vmem:[#allocation13 + $0x20] sm:$0xff]  ;;  %v1548_v37 = vld [vmem:[#allocation13 + $0xb0] sm:$0xff] }
 0x4d6   : > { %2956 = vmatpush3.bf16.msra.mxu0 %v2955_v26  ;;  %2933 = vmatprep.subr.bf16.mxu1 %v3398_v20  ;;  %v1530_v34 = vld [vmem:[#allocation13 + $0x28] sm:$0xff]  ;;  %v2937_v35 = vpack.c.bf16 %v1547_v32, %v1546_v31  ;;  %v1549_v38 = vld [vmem:[#allocation13 + $0xb8] sm:$0xff]  ;;  %v1531_v39 = vld [vmem:[#allocation13 + $0x30] sm:$0xff] }
 0x4d7   : > { %2957 = vmatprep.subr.bf16.mxu0 %v3398_v20  ;;  %v2961_v36 = vpack.c.bf16 %v1530_v34, %v1529_v33  ;;  %v1532_v40 = vld [vmem:[#allocation13 + $0x38] sm:$0xff]  ;;  %v2940_v41 = vpack.c.bf16 %v1549_v38, %v1548_v37  ;;  %v1550_v43 = vld [vmem:[#allocation13 + $0xc0] sm:$0xff]  ;;  %v1551_v44 = vld [vmem:[#allocation13 + $0xc8] sm:$0xff] }
 0x4d8   : > { %v2964_v42 = vpack.c.bf16 %v1532_v40, %v1531_v39  ;;  %v1533_v45 = vld [vmem:[#allocation13 + $0x40] sm:$0xff]  ;;  %v1534_v46 = vld [vmem:[#allocation13 + $0x48] sm:$0xff]  ;;  %v2943_v47 = vpack.c.bf16 %v1551_v44, %v1550_v43  ;;  %v1552_v49 = vld [vmem:[#allocation13 + $0xd0] sm:$0xff] }
 0x4d9   : > { %2935 = vmatpush3.bf16.msra.mxu1 %v2934_v29  ;;  %v2967_v48 = vpack.c.bf16 %v1534_v46, %v1533_v45  ;;  %v1553_v50 = vld [vmem:[#allocation13 + $0xd8] sm:$0xff]  ;;  %v1535_v51 = vld [vmem:[#allocation13 + $0x50] sm:$0xff]  ;;  %v1554_v55 = vld [vmem:[#allocation13 + $0xe0] sm:$0xff] }
 0x4da   : > { %2959 = vmatpush3.bf16.msra.mxu0 %v2958_v30  ;;  %2936 = vmatprep.subr.bf16.mxu1 %v3398_v20  ;;  %v1536_v52 = vld [vmem:[#allocation13 + $0x58] sm:$0xff]  ;;  %v2946_v53 = vpack.c.bf16 %v1553_v50, %v1552_v49  ;;  %v1555_v56 = vld [vmem:[#allocation13 + $0xe8] sm:$0xff]  ;;  %v1537_v57 = vld [vmem:[#allocation13 + $0x60] sm:$0xff] }
 0x4db   : > { %2960 = vmatprep.subr.bf16.mxu0 %v3398_v20  ;;  %v2970_v54 = vpack.c.bf16 %v1536_v52, %v1535_v51  ;;  %v1538_v58 = vld [vmem:[#allocation13 + $0x68] sm:$0xff]  ;;  %v2949_v59 = vpack.c.bf16 %v1555_v56, %v1554_v55  ;;  %v1556_v61 = vld [vmem:[#allocation13 + $0xf0] sm:$0xff]  ;;  %v1557_v62 = vld [vmem:[#allocation13 + $0xf8] sm:$0xff] }
 0x4dc   : > { %v2973_v60 = vpack.c.bf16 %v1538_v58, %v1537_v57  ;;  %v1539_v63 = vld [vmem:[#allocation13 + $0x70] sm:$0xff]  ;;  %v1540_v1 = vld [vmem:[#allocation13 + $0x78] sm:$0xff]  ;;  %v2952_v2 = vpack.c.bf16 %v1557_v62, %v1556_v61  ;;  %v1524_v5 = vld [vmem:[#allocation6] sm:$0xff] }
 0x4dd   : > { %2938 = vmatpush3.bf16.msra.mxu1 %v2937_v35  ;;  %v2976_v3 = vpack.c.bf16 %v1540_v1, %v1539_v63  ;;  %v2186_v8 = vld [vmem:[%s4005_s14] ss:$0 sm:$0xff] }
 0x4de   : > { %2962 = vmatpush3.bf16.msra.mxu0 %v2961_v36  ;;  %2939 = vmatprep.subr.bf16.mxu1 %v3398_v20 }
 0x4df   : > { %2963 = vmatprep.subr.bf16.mxu0 %v3398_v20 }
 0x4e1   : > { %2941 = vmatpush3.bf16.msra.mxu1 %v2940_v41 }
 0x4e2   : > { %2965 = vmatpush3.bf16.msra.mxu0 %v2964_v42  ;;  %2942 = vmatprep.subr.bf16.mxu1 %v3398_v20 }
 0x4e3   : > { %2966 = vmatprep.subr.bf16.mxu0 %v3398_v20 }
 0x4e5   : > { %2944 = vmatpush3.bf16.msra.mxu1 %v2943_v47 }
 0x4e6   : > { %2968 = vmatpush3.bf16.msra.mxu0 %v2967_v48  ;;  %2945 = vmatprep.subr.bf16.mxu1 %v3398_v20 }
 0x4e7   : > { %2969 = vmatprep.subr.bf16.mxu0 %v3398_v20 }
 0x4e9   : > { %2947 = vmatpush3.bf16.msra.mxu1 %v2946_v53 }
 0x4ea   : > { %2971 = vmatpush3.bf16.msra.mxu0 %v2970_v54  ;;  %2948 = vmatprep.subr.bf16.mxu1 %v3398_v20 }
 0x4eb   : > { %2972 = vmatprep.subr.bf16.mxu0 %v3398_v20 }
 0x4ed   : > { %2950 = vmatpush3.bf16.msra.mxu1 %v2949_v59 }
 0x4ee   : > { %2974 = vmatpush3.bf16.msra.mxu0 %v2973_v60  ;;  %2951 = vmatprep.subr.bf16.mxu1 %v3398_v20 }
 0x4ef   : > { %2975 = vmatprep.subr.bf16.mxu0 %v3398_v20 }
 0x4f1   : > { %2953 = vmatpush3.bf16.msra.mxu1 %v2952_v2 }
 0x4f2   : > { %2977 = vmatpush3.bf16.msra.mxu0 %v2976_v3 }
 0x4f4   : > { %2644 = vmatmul.mubr.f32.vlgmr.msra.gmra.mrb[6].mxu1 %v3856_v18 }
 0x4f5   : > { %2679 = vmatmul.mubr.f32.vlgmr.msra.gmra.mrb[12].mxu0 %v1524_v5 }
 0x5c7   : > { %v1624_v6 = vpop.f32.mrb[6].mxu1  ;;  %1709 = sbr.rel (%p2164_p9) target bundleno = 1486 (0x5ce), region = 156 }
 0x5c8   : > { %v1694_v7 = vpop.f32.mrb[12].mxu0  ;;  %v2645_v9 = vpop.f32.mrb[7].mxu1 }
 0x5c9   : > { %v1695_v10 = vadd.f32 %v1694_v7, %v1624_v6  ;;  %v2680_v11 = vpop.f32.mrb[13].mxu0 }
 0x5cb   : > { %v3887_v12 = vadd.f32 %v2186_v8, %v1695_v10 }
 0x5cd   : > { %v1706_v13 = vmax.f32 %v3887_v12, 0.0 }
 0x5ce PF: > { %1713 = sbr.rel (%p2165_p10) target bundleno = 1493 (0x5d5), region = 160  ;;  %v1714_v17 = vld [vmem:[#allocation7 + $0x8] sm:$0xf] (!%p2165_p10) }
 0x5cf   : > { %1715 = vst [vmem:[#allocation7] sm:$0xf] (!%p2165_p10), %v1714_v17 }
 0x5d5 PF: > { %2978 = vmatprep.subr.bf16.mxu1 %v3398_v20  ;;  %v1735_v15 = vld [vmem:[#allocation15 + $0x80] sm:$0xff]  ;;  %v1736_v16 = vld [vmem:[#allocation15 + $0x88] sm:$0xff]  ;;  %3002 = vmatprep.subr.bf16.mxu0 %v3398_v20  ;;  %1716 = vst [vmem:[#allocation7 + $0x4] sm:$0xff] %v1706_v13  ;;  %v1737_v22 = vld [vmem:[#allocation15 + $0x90] sm:$0xff]  ;;  %s4006_s11 = sld [smem:[#allocation33_spill]]  ;;  %s4007_s30 = sld [smem:[#allocation34_spill]] }
 0x5d6   : > { %v1718_v19 = vld [vmem:[#allocation15] sm:$0xff]  ;;  %v2979_v0 = vpack.c.bf16 %v1736_v16, %v1735_v15  ;;  %v1719_v21 = vld [vmem:[#allocation15 + $0x8] sm:$0xff]  ;;  %v1738_v23 = vld [vmem:[#allocation15 + $0x98] sm:$0xff]  ;;  %2713 = vmatprep.mubr.msk.f32.mxu1 %vm3396_vm4, %v3395_v4  ;;  %2748 = vmatprep.mubr.msk.f32.mxu0 %vm3396_vm4, %v3395_v4 }
 0x5d7   : > { %v3003_v24 = vpack.c.bf16 %v1719_v21, %v1718_v19  ;;  %v1720_v25 = vld [vmem:[#allocation15 + $0x10] sm:$0xff]  ;;  %v1721_v26 = vld [vmem:[#allocation15 + $0x18] sm:$0xff]  ;;  %v2982_v27 = vpack.c.bf16 %v1738_v23, %v1737_v22  ;;  %v1739_v29 = vld [vmem:[#allocation15 + $0xa0] sm:$0xff] }
 0x5d8   : > { %2980 = vmatpush3.bf16.msra.mxu1 %v2979_v0  ;;  %v3006_v28 = vpack.c.bf16 %v1721_v26, %v1720_v25  ;;  %v1740_v30 = vld [vmem:[#allocation15 + $0xa8] sm:$0xff]  ;;  %v1722_v31 = vld [vmem:[#allocation15 + $0x20] sm:$0xff]  ;;  %v1741_v35 = vld [vmem:[#allocation15 + $0xb0] sm:$0xff] }
 0x5d9   : > { %3004 = vmatpush3.bf16.msra.mxu0 %v3003_v24  ;;  %2981 = vmatprep.subr.bf16.mxu1 %v3398_v20  ;;  %v1723_v32 = vld [vmem:[#allocation15 + $0x28] sm:$0xff]  ;;  %v2985_v33 = vpack.c.bf16 %v1740_v30, %v1739_v29  ;;  %v1742_v36 = vld [vmem:[#allocation15 + $0xb8] sm:$0xff]  ;;  %v1724_v37 = vld [vmem:[#allocation15 + $0x30] sm:$0xff] }
 0x5da   : > { %3005 = vmatprep.subr.bf16.mxu0 %v3398_v20  ;;  %v3009_v34 = vpack.c.bf16 %v1723_v32, %v1722_v31  ;;  %v1725_v38 = vld [vmem:[#allocation15 + $0x38] sm:$0xff]  ;;  %v2988_v39 = vpack.c.bf16 %v1742_v36, %v1741_v35  ;;  %v1743_v41 = vld [vmem:[#allocation15 + $0xc0] sm:$0xff]  ;;  %v1744_v42 = vld [vmem:[#allocation15 + $0xc8] sm:$0xff] }
 0x5db   : > { %v3012_v40 = vpack.c.bf16 %v1725_v38, %v1724_v37  ;;  %v1726_v43 = vld [vmem:[#allocation15 + $0x40] sm:$0xff]  ;;  %v1727_v44 = vld [vmem:[#allocation15 + $0x48] sm:$0xff]  ;;  %v2991_v45 = vpack.c.bf16 %v1744_v42, %v1743_v41  ;;  %v1745_v47 = vld [vmem:[#allocation15 + $0xd0] sm:$0xff] }
 0x5dc   : > { %2983 = vmatpush3.bf16.msra.mxu1 %v2982_v27  ;;  %v3015_v46 = vpack.c.bf16 %v1727_v44, %v1726_v43  ;;  %v1746_v48 = vld [vmem:[#allocation15 + $0xd8] sm:$0xff]  ;;  %v1728_v49 = vld [vmem:[#allocation15 + $0x50] sm:$0xff]  ;;  %v1747_v53 = vld [vmem:[#allocation15 + $0xe0] sm:$0xff] }
 0x5dd   : > { %3007 = vmatpush3.bf16.msra.mxu0 %v3006_v28  ;;  %2984 = vmatprep.subr.bf16.mxu1 %v3398_v20  ;;  %v1729_v50 = vld [vmem:[#allocation15 + $0x58] sm:$0xff]  ;;  %v2994_v51 = vpack.c.bf16 %v1746_v48, %v1745_v47  ;;  %v1748_v54 = vld [vmem:[#allocation15 + $0xe8] sm:$0xff]  ;;  %v1730_v55 = vld [vmem:[#allocation15 + $0x60] sm:$0xff] }
 0x5de   : > { %3008 = vmatprep.subr.bf16.mxu0 %v3398_v20  ;;  %v3018_v52 = vpack.c.bf16 %v1729_v50, %v1728_v49  ;;  %v1731_v56 = vld [vmem:[#allocation15 + $0x68] sm:$0xff]  ;;  %v2997_v57 = vpack.c.bf16 %v1748_v54, %v1747_v53  ;;  %v1749_v59 = vld [vmem:[#allocation15 + $0xf0] sm:$0xff]  ;;  %v1750_v60 = vld [vmem:[#allocation15 + $0xf8] sm:$0xff] }
 0x5df   : > { %v3021_v58 = vpack.c.bf16 %v1731_v56, %v1730_v55  ;;  %v1732_v61 = vld [vmem:[#allocation15 + $0x70] sm:$0xff]  ;;  %v1733_v62 = vld [vmem:[#allocation15 + $0x78] sm:$0xff]  ;;  %v3000_v63 = vpack.c.bf16 %v1750_v60, %v1749_v59  ;;  %v1900_v2 = vld [vmem:[#allocation16] sm:$0xff] }
 0x5e0   : > { %2986 = vmatpush3.bf16.msra.mxu1 %v2985_v33  ;;  %v3024_v1 = vpack.c.bf16 %v1733_v62, %v1732_v61  ;;  %v1901_v3 = vld [vmem:[#allocation16 + $0x8] sm:$0xff]  ;;  %v1717_v6 = vld [vmem:[#allocation7] sm:$0xff]  ;;  %v1903_v8 = vld [vmem:[#allocation16 + $0x18] sm:$0xff] }
 0x5e1   : > { %3010 = vmatpush3.bf16.msra.mxu0 %v3009_v34  ;;  %2987 = vmatprep.subr.bf16.mxu1 %v3398_v20  ;;  %v3027_v5 = vpack.c.bf16 %v1901_v3, %v1900_v2  ;;  %v1902_v7 = vld [vmem:[#allocation16 + $0x10] sm:$0xff]  ;;  %v1904_v10 = vld [vmem:[#allocation16 + $0x20] sm:$0xff]  ;;  %v1905_v11 = vld [vmem:[#allocation16 + $0x28] sm:$0xff] }
 0x5e2   : > { %3011 = vmatprep.subr.bf16.mxu0 %v3398_v20  ;;  %v3030_v9 = vpack.c.bf16 %v1903_v8, %v1902_v7  ;;  %v3033_v14 = vpack.c.bf16 %v1905_v11, %v1904_v10  ;;  %v1906_v17 = vld [vmem:[#allocation16 + $0x30] sm:$0xff]  ;;  %v1907_v15 = vld [vmem:[#allocation16 + $0x38] sm:$0xff]  ;;  %v1908_v12 = vld [vmem:[#allocation16 + $0x40] sm:$0xff] }
 0x5e3   : > { %v3036_v16 = vpack.c.bf16 %v1907_v15, %v1906_v17  ;;  %v1910_v0 = vld [vmem:[#allocation16 + $0x50] sm:$0xff]  ;;  %v1911_v21 = vld [vmem:[#allocation16 + $0x58] sm:$0xff]  ;;  %v1912_v22 = vld [vmem:[#allocation16 + $0x60] sm:$0xff] }
 0x5e4   : > { %2989 = vmatpush3.bf16.msra.mxu1 %v2988_v39  ;;  %v1913_v23 = vld [vmem:[#allocation16 + $0x68] sm:$0xff]  ;;  %v1914_v25 = vld [vmem:[#allocation16 + $0x70] sm:$0xff]  ;;  %v1915_v26 = vld [vmem:[#allocation16 + $0x78] sm:$0xff] }
 0x5e5   : > { %3013 = vmatpush3.bf16.msra.mxu0 %v3012_v40  ;;  %2990 = vmatprep.subr.bf16.mxu1 %v3398_v20  ;;  %v3045_v24 = vpack.c.bf16 %v1913_v23, %v1912_v22  ;;  %v3048_v27 = vpack.c.bf16 %v1915_v26, %v1914_v25  ;;  %v2189_v33 = vld [vmem:[%s4006_s11] ss:$0 sm:$0xff] }
 0x5e6   : > { %3014 = vmatprep.subr.bf16.mxu0 %v3398_v20  ;;  %v2190_v35 = vld [vmem:[%s4007_s30] ss:$0 sm:$0xff] }
 0x5e8   : > { %2992 = vmatpush3.bf16.msra.mxu1 %v2991_v45 }
 0x5e9   : > { %3016 = vmatpush3.bf16.msra.mxu0 %v3015_v46  ;;  %2993 = vmatprep.subr.bf16.mxu1 %v3398_v20 }
 0x5ea   : > { %3017 = vmatprep.subr.bf16.mxu0 %v3398_v20 }
 0x5ec   : > { %2995 = vmatpush3.bf16.msra.mxu1 %v2994_v51 }
 0x5ed   : > { %3019 = vmatpush3.bf16.msra.mxu0 %v3018_v52  ;;  %2996 = vmatprep.subr.bf16.mxu1 %v3398_v20 }
 0x5ee   : > { %3020 = vmatprep.subr.bf16.mxu0 %v3398_v20 }
 0x5f0   : > { %2998 = vmatpush3.bf16.msra.mxu1 %v2997_v57 }
 0x5f1   : > { %3022 = vmatpush3.bf16.msra.mxu0 %v3021_v58  ;;  %2999 = vmatprep.subr.bf16.mxu1 %v3398_v20 }
 0x5f2   : > { %3023 = vmatprep.subr.bf16.mxu0 %v3398_v20 }
 0x5f4   : > { %3001 = vmatpush3.bf16.msra.mxu1 %v3000_v63 }
 0x5f5   : > { %3025 = vmatpush3.bf16.msra.mxu0 %v3024_v1  ;;  %3026 = vmatprep.subr.bf16.mxu1 %v3398_v20 }
 0x5f7   : > { %2714 = vmatmul.mubr.f32.vlgmr.msra.gmra.mrb[8].mxu1 %v1706_v13  ;;  %v1909_v13 = vld [vmem:[#allocation16 + $0x48] sm:$0xff] }
 0x5f8   : > { %2749 = vmatmul.mubr.f32.vlgmr.msra.gmra.mrb[14].mxu0 %v1717_v6  ;;  %3028 = vmatpush3.bf16.msra.mxu1 %v3027_v5  ;;  %v3039_v19 = vpack.c.bf16 %v1909_v13, %v1908_v12 }
 0x5f9   : > { %3029 = vmatprep.subr.bf16.mxu1 %v3398_v20  ;;  %2783 = vmatprep.mubr.msk.f32.mxu1 %vm3396_vm4, %v3395_v4  ;;  %v3042_v4 = vpack.c.bf16 %v1911_v21, %v1910_v0 }
 0x5fc   : > { %3031 = vmatpush3.bf16.msra.mxu1 %v3030_v9 }
 0x5fd   : > { %3032 = vmatprep.subr.bf16.mxu1 %v3398_v20 }
 0x600   : > { %3034 = vmatpush3.bf16.msra.mxu1 %v3033_v14 }
 0x601   : > { %3035 = vmatprep.subr.bf16.mxu1 %v3398_v20 }
 0x604   : > { %3037 = vmatpush3.bf16.msra.mxu1 %v3036_v16 }
 0x605   : > { %3038 = vmatprep.subr.bf16.mxu1 %v3398_v20 }
 0x608   : > { %3040 = vmatpush3.bf16.msra.mxu1 %v3039_v19 }
 0x609   : > { %3041 = vmatprep.subr.bf16.mxu1 %v3398_v20 }
 0x60c   : > { %3043 = vmatpush3.bf16.msra.mxu1 %v3042_v4 }
 0x60d   : > { %3044 = vmatprep.subr.bf16.mxu1 %v3398_v20 }
 0x610   : > { %3046 = vmatpush3.bf16.msra.mxu1 %v3045_v24 }
 0x611   : > { %3047 = vmatprep.subr.bf16.mxu1 %v3398_v20 }
 0x614   : > { %3049 = vmatpush3.bf16.msra.mxu1 %v3048_v27 }
 0x617   : > { %2784 = vmatmul.mubr.f32.vlgmr.msra.gmra.mrb[10].mxu1 %v3856_v18 }
 0x6ca   : > { %v1817_v28 = vpop.f32.mrb[8].mxu1 }
 0x6cb   : > { %v2715_v29 = vpop.f32.mrb[9].mxu1  ;;  %v1887_v30 = vpop.f32.mrb[14].mxu0 }
 0x6cc   : > { %v1888_v31 = vadd.f32 %v1887_v30, %v1817_v28  ;;  %v2750_v32 = vpop.f32.mrb[15].mxu0 }
 0x6ce   : > { %v1898_v34 = vadd.f32 %v2189_v33, %v1888_v31 }
 0x6d0   : > { %v1899_v20 = vmax.f32 %v1898_v34, 0.0 }
 0x6ea   : > { %v1989_v36 = vpop.f32.mrb[10].mxu1 }
 0x6eb   : > { %v1990_v37 = vadd.f32 %v2190_v35, %v1989_v36  ;;  %v2785_v38 = vpop.f32.mrb[11].mxu1 }
 0x6ed   : > { %v1993_v39 = vadd.f32 %v1990_v37, %v1899_v20 }
 0x6ef   : > { %v1994_v18 = vmax.f32 %v1993_v39, 0.0 }
 0x6f1   : > { %1995 = vst [vmem:[%s3712_s0] sm:$0xff] %v1994_v18 }
 0x6f2 PF: > { %s4008_s21 = sld [smem:[#allocation22_spill]]  ;;  %s4009_s18 = sld [smem:[#allocation23_spill]] }
 0x6f3   : > { %s4010_s24 = smov %s3376_s26  ;;  %s4011_s25 = smov %s3380_s27 }
 0x6f4   : > { %s4012_s26 = smov %s4015_s10 }
 0x6f8   : > { %s31_s28 = sadd.s32 1, %s4008_s21   ;;  %s4013_s27 = smov %s4009_s18 }
 0x6f9   : > { %p28_p11 = scmp.ge.s32.totalorder %s31_s28, 6  }
 0x6fb   :  { %30 = sbr.rel (!%p28_p11) target bundleno = 18 (0x12), region = 197 }
 0x702   :  { %2023 = vsyncpa [#allocation9], 1 }
 0x703   :  { %2025 = vsyncpa [#allocation9 + $0x1], 1 }
 0x704   :  { %2026 = vsyncpa [#allocation11], 1 }
 0x705   :  { %2027 = vsyncpa [#allocation14], 1 }
 0x706   :  { %2028 = vsyncpa [#allocation17], 1 }

</bundles_post_ra>
